<compile_context>
chip_gen: v5e
topology: v5e:2x2
jax: 0.10.0
libtpu: 0.0.40
codegen_flags: <defaults>
</compile_context>

<pallas_src>
import functools

import jax
import jax.numpy as jnp
import numpy as np
from jax import lax
from jax.experimental import pallas as pl
from jax.experimental.pallas import tpu as pltpu


def _attn_block_kernel(x_ref, gamma_ref, beta_ref, gmask_ref, w_in_ref, b_in_ref,
                       w_out_ref, b_out_ref, o_ref,
                       qkv_ref, attn_ref, pacc_ref, m_ref, l_ref,
                       *, num_heads, head_channels, kv_tile, eps, inv_count,
                       mm_dtype, exp_dtype, approx_recip):
    hc = head_channels
    C = num_heads * hc
    T = x_ref.shape[-1]
    n_kv = T // kv_tile

    x = x_ref[...]                                              # (C, T) f32

    # ---- GroupNorm: aligned lane reductions + one constant-mask matmul ------
    ch_sum = jnp.sum(x, axis=1, keepdims=True)                  # (C, 1)
    ch_sq = jnp.sum(x * x, axis=1, keepdims=True)               # (C, 1)
    stats = jnp.concatenate([ch_sum, ch_sq], axis=1)            # (C, 2)
    gstats = jnp.dot(gmask_ref[...], stats,
                     preferred_element_type=jnp.float32) * inv_count   # (C, 2)
    mean = gstats[:, 0:1]
    var = gstats[:, 1:2] - mean * mean          # biased var (as torch GroupNorm)
    scale = gamma_ref[...] * lax.rsqrt(var + eps)
    shift = beta_ref[...] - mean * scale
    normed = x * scale + shift                  # single (C, T) VPU pass

    # ---- proj_in (1x1 conv == channel matmul); rows already [Q | K | V] -----
    qkv = jnp.dot(w_in_ref[...], normed,
                  preferred_element_type=jnp.float32) + b_in_ref[...]
    qkv_ref[...] = qkv.astype(qkv_ref.dtype)

    def _recip(l):
        return pl.reciprocal(l, approx=True) if approx_recip else 1.0 / l

    # ---- per-head attention; each head writes its slice of attn_ref ---------
    @pl.loop(0, num_heads, unroll=bool(num_heads <= 4))
    def _head(hd):
        q_off = pl.multiple_of(hd * hc, hc)
        k_off = pl.multiple_of(C + hd * hc, hc)
        v_off = pl.multiple_of(2 * C + hd * hc, hc)
        q = qkv_ref[pl.ds(q_off, hc), :].astype(mm_dtype)       # (hc, T)

        if n_kv == 1:
            # Simple one-pass softmax (whole key axis fits in one tile).
            k = qkv_ref[pl.ds(k_off, hc), :].astype(mm_dtype)   # (hc, T)
            v = qkv_ref[pl.ds(v_off, hc), :].astype(mm_dtype)   # (hc, T)
            # logits[s, t] = sum_c k[c, s] * q[c, t]  (keys on sublanes,
            # queries on lanes) -> softmax stats are (1, T) lane vectors.
            logits = lax.dot_general(k, q, (((0,), (0,)), ((), ())),
                                     preferred_element_type=jnp.float32)
            m = jnp.max(logits, axis=0, keepdims=True)          # (1, T)
            p = jnp.exp((logits - m).astype(exp_dtype))         # (T, T)
            l = jnp.sum(p, axis=0, keepdims=True, dtype=jnp.float32)
            head_out = jnp.dot(v, p.astype(mm_dtype),
                               preferred_element_type=jnp.float32)   # (hc, T)
            attn_ref[pl.ds(q_off, hc), :] = (head_out * _recip(l)).astype(attn_ref.dtype)
        else:
            # Flash-tiled online softmax over kv chunks.
            m_ref[...] = jnp.full_like(m_ref, -jnp.inf)
            l_ref[...] = jnp.zeros_like(l_ref)
            pacc_ref[...] = jnp.zeros_like(pacc_ref)

            @pl.loop(0, n_kv)
            def _kv(j):
                kv_start = pl.multiple_of(j * kv_tile, kv_tile)
                k = qkv_ref[pl.ds(k_off, hc), pl.ds(kv_start, kv_tile)].astype(mm_dtype)
                v = qkv_ref[pl.ds(v_off, hc), pl.ds(kv_start, kv_tile)].astype(mm_dtype)
                logits = lax.dot_general(k, q, (((0,), (0,)), ((), ())),
                                         preferred_element_type=jnp.float32)  # (kvt, T)
                m_new = jnp.maximum(m_ref[...],
                                    jnp.max(logits, axis=0, keepdims=True))   # (1, T)
                alpha = jnp.exp(m_ref[...] - m_new)                           # (1, T)
                p = jnp.exp((logits - m_new).astype(exp_dtype))               # (kvt, T)
                l_ref[...] = alpha * l_ref[...] + jnp.sum(
                    p, axis=0, keepdims=True, dtype=jnp.float32)
                pacc_ref[...] = alpha * pacc_ref[...] + jnp.dot(
                    v, p.astype(mm_dtype), preferred_element_type=jnp.float32)
                m_ref[...] = m_new

            attn_ref[pl.ds(q_off, hc), :] = (
                pacc_ref[...] * _recip(l_ref[...])).astype(attn_ref.dtype)

    # ---- single proj_out matmul + bias + residual, one store ----------------
    o_ref[...] = (x_ref[...] + b_out_ref[...] +
                  jnp.dot(w_out_ref[...], attn_ref[...],
                          preferred_element_type=jnp.float32)).astype(o_ref.dtype)


def _device_kind():
    try:
        return jax.devices()[0].device_kind.lower()
    except Exception:
        return ""


def _vmem_cap_bytes(kind):
    if "v7" in kind or "7x" in kind:
        return 56 * 1024 * 1024           # leave headroom on v7x's 64 MiB
    if "v5" in kind or "v6" in kind or "trillium" in kind:
        return 100 * 1024 * 1024          # 128 MiB physical on v5e/v6e
    return 64 * 1024 * 1024


def _default_exp_dtype(kind, mm_dtype):
    if jnp.dtype(mm_dtype) != jnp.dtype(jnp.bfloat16):
        return jnp.float32
    if "v6" in kind or "v7" in kind or "7x" in kind or "trillium" in kind:
        return jnp.bfloat16               # bf16 EUP on v6e/v7x
    return jnp.float32                    # v5e: no bf16 EUP/VPU


def _choose_kv_tile(t, max_kv_tile):
    if t <= max_kv_tile:
        return t
    start = max_kv_tile - (max_kv_tile % 128)
    for cand in range(start, 127, -128):
        if t % cand == 0:
            return cand
    return t                              # no multiple-of-128 divisor; no tiling


def attn_block(x, params, *, head_channels, num_groups, eps=1e-5,
               attn_matmul_dtype=jnp.bfloat16, softmax_exp_dtype=None,
               approx_reciprocal=True, max_kv_tile=1024):
    """x: (N, C, H, W) float32 (NCHW, same as the PyTorch module).

    params = (gamma, beta, w_in, b_in, w_out, b_out) in the module's natural
    layout: gamma/beta (C,1), w_in (3C,C), b_in (3C,1), w_out (C,C), b_out (C,1).
    """
    n, c, h, w = x.shape
    assert c % head_channels == 0 and c % num_groups == 0
    num_heads = c // head_channels
    t = h * w
    gamma, beta, w_in, b_in, w_out, b_out = params

    kind = _device_kind()
    mm_dtype = jnp.dtype(attn_matmul_dtype)
    exp_dtype = (jnp.dtype(softmax_exp_dtype) if softmax_exp_dtype is not None
                 else _default_exp_dtype(kind, mm_dtype))

    # qkv / attn scratch dtype: only narrow if per-head sublane slices stay
    # tile-aligned (bf16 sublane tile is 16 rows).
    sub_tile = 8 * (4 // mm_dtype.itemsize)
    head_dtype = mm_dtype if head_channels % sub_tile == 0 else jnp.float32

    kv_tile = _choose_kv_tile(t, max_kv_tile)

    # ---- one-time parameter massaging (outside the kernel) ------------------
    # Reorder proj_in rows from per-head [q0 k0 v0 | q1 k1 v1 | ...] to
    # [Q_allheads | K_allheads | V_allheads]; fold the combined attention scale
    # 1/sqrt(hc) into the Q rows of w_in / b_in.
    idx = np.arange(3 * c).reshape(num_heads, 3, head_channels)
    perm = np.concatenate([idx[:, 0].reshape(-1),
                           idx[:, 1].reshape(-1),
                           idx[:, 2].reshape(-1)])
    row_scale = np.ones((3 * c, 1), np.float32)
    row_scale[:c] = 1.0 / np.sqrt(head_channels)
    w_in_r = jnp.asarray(w_in, jnp.float32)[perm, :] * row_scale
    b_in_r = jnp.asarray(b_in, jnp.float32)[perm, :] * row_scale
    w_out_c = jnp.asarray(w_out, jnp.float32).astype(head_dtype)

    # GroupNorm group-indicator matrix (constant; DMA'd once, reused all steps).
    gidx = np.arange(c) // (c // num_groups)
    gmask = jnp.asarray((gidx[:, None] == gidx[None, :]).astype(np.float32))
    inv_count = 1.0 / ((c // num_groups) * t)

    x3 = x.reshape(n, c, t)

    kernel = functools.partial(
        _attn_block_kernel, num_heads=num_heads, head_channels=head_channels,
        kv_tile=kv_tile, eps=float(eps), inv_count=float(inv_count),
        mm_dtype=mm_dtype, exp_dtype=exp_dtype,
        approx_recip=bool(approx_reciprocal))

    hd_sz = jnp.dtype(head_dtype).itemsize
    est = (2 * 2 * c * t * 4                          # x / out blocks (double buffered)
           + 3 * c * t * hd_sz + c * t * hd_sz        # qkv + attn scratch
           + head_channels * t * 4 + 2 * t * 4        # pacc + m + l scratch
           + 2 * 4 * (c * c + 3 * c * c + c * c + 8 * c)   # params, double buffered
           + 3 * kv_tile * t * 4                      # logits / p temporaries
           + 2 * c * t * 4)                           # normed / qkv intermediates
    vmem_limit = int(min(_vmem_cap_bytes(kind),
                         max(2 * est, 16 * 1024 * 1024)))

    out = pl.pallas_call(
        kernel,
        out_shape=jax.ShapeDtypeStruct((n, c, t), x.dtype),
        grid=(n,),
        in_specs=[
            pl.BlockSpec((pl.Squeezed(), c, t), lambda i: (i, 0, 0)),   # x
            pl.BlockSpec((c, 1), lambda i: (0, 0)),                     # gamma
            pl.BlockSpec((c, 1), lambda i: (0, 0)),                     # beta
            pl.BlockSpec((c, c), lambda i: (0, 0)),                     # group mask
            pl.BlockSpec((3 * c, c), lambda i: (0, 0)),                 # w_in (reordered, Q-scaled)
            pl.BlockSpec((3 * c, 1), lambda i: (0, 0)),                 # b_in (reordered, Q-scaled)
            pl.BlockSpec((c, c), lambda i: (0, 0)),                     # w_out
            pl.BlockSpec((c, 1), lambda i: (0, 0)),                     # b_out
        ],
        out_specs=pl.BlockSpec((pl.Squeezed(), c, t), lambda i: (i, 0, 0)),
        scratch_shapes=[
            pltpu.VMEM((3 * c, t), head_dtype),       # qkv
            pltpu.VMEM((c, t), head_dtype),           # per-head attention outputs
            pltpu.VMEM((head_channels, t), jnp.float32),   # flash PV accumulator
            pltpu.VMEM((1, t), jnp.float32),          # running max
            pltpu.VMEM((1, t), jnp.float32),          # running sum
        ],
        compiler_params=pltpu.CompilerParams(
            dimension_semantics=("parallel",),
            vmem_limit_bytes=vmem_limit),
    )(x3, jnp.asarray(gamma, jnp.float32), jnp.asarray(beta, jnp.float32),
      gmask, w_in_r, b_in_r, w_out_c, jnp.asarray(b_out, jnp.float32))
    return out.reshape(n, c, h, w)


def ref_attn_block(x, params, *, head_channels, num_groups, eps=1e-5):
    """Pure-JAX mirror of the PyTorch forward, for verification."""
    gamma, beta, w_in, b_in, w_out, b_out = params
    n, c, h, w = x.shape
    num_heads = c // head_channels
    t = h * w
    temp = x.reshape(n, c, t)
    xg = temp.reshape(n, num_groups, -1)
    mean = xg.mean(-1, keepdims=True)
    var = xg.var(-1, keepdims=True)
    temp = ((xg - mean) / jnp.sqrt(var + eps)).reshape(n, c, t)
    temp = temp * gamma.reshape(1, c, 1) + beta.reshape(1, c, 1)
    qkv = jnp.einsum('oc,nct->not', w_in, temp) + b_in.reshape(1, -1, 1)
    qkv = qkv.reshape(n * num_heads, 3 * head_channels, t)
    q, k, v = jnp.split(qkv, 3, axis=1)
    scale = (1.0 / head_channels) ** 0.25
    wts = jnp.einsum('bct,bcs->bts', q * scale, k * scale)
    wts = jax.nn.softmax(wts, axis=-1)
    attns = jnp.einsum('bts,bcs->bct', wts, v).reshape(n, c, t)
    out = jnp.einsum('oc,nct->not', w_out, attns) + b_out.reshape(1, -1, 1)
    return x + out.reshape(n, c, h, w)


if __name__ == "__main__":
    # Small but representative shapes: in_channels=16, head_channels=8 (2 heads),
    # GroupNorm with 4 groups, 16x16 spatial.
    n, c, h, w = 2, 16, 16, 16
    head_channels, num_groups = 8, 4

    key = jax.random.PRNGKey(0)
    ks = jax.random.split(key, 7)
    x = jax.random.normal(ks[0], (n, c, h, w), jnp.float32)

    gamma = 1.0 + 0.1 * jax.random.normal(ks[1], (c, 1), jnp.float32)
    beta = 0.1 * jax.random.normal(ks[2], (c, 1), jnp.float32)
    w_in = 0.2 * jax.random.normal(ks[3], (3 * c, c), jnp.float32)
    b_in = 0.1 * jax.random.normal(ks[4], (3 * c, 1), jnp.float32)
    w_out = 0.2 * jax.random.normal(ks[5], (c, c), jnp.float32)
    b_out = 0.1 * jax.random.normal(ks[6], (c, 1), jnp.float32)
    params = (gamma, beta, w_in, b_in, w_out, b_out)

    out = attn_block(x, params, head_channels=head_channels,
                     num_groups=num_groups)
    out = jax.block_until_ready(out)

    ref = ref_attn_block(x, params, head_channels=head_channels,
                         num_groups=num_groups)
    # bf16 MXU inputs (+ bf16 exp on v6e/v7x) + approx reciprocal -> slightly
    # looser tolerance than pure f32.
    np.testing.assert_allclose(np.asarray(out), np.asarray(ref),
                               rtol=2e-2, atol=2e-2)
    print("KERNEL_OK")
</pallas_src>

<mosaic_0001>
module attributes {stable_mosaic.version = 11 : i64} {
  func.func @_attn_block_kernel(%arg0: i32, %arg1: memref<1x16x256xf32, #tpu.memory_space<vmem>>, %arg2: memref<16x1xf32, #tpu.memory_space<vmem>>, %arg3: memref<16x1xf32, #tpu.memory_space<vmem>>, %arg4: memref<16x16xf32, #tpu.memory_space<vmem>>, %arg5: memref<48x16xf32, #tpu.memory_space<vmem>>, %arg6: memref<48x1xf32, #tpu.memory_space<vmem>>, %arg7: memref<16x16xf32, #tpu.memory_space<vmem>>, %arg8: memref<16x1xf32, #tpu.memory_space<vmem>>, %arg9: memref<1x16x256xf32, #tpu.memory_space<vmem>>, %arg10: memref<48x256xf32, #tpu.memory_space<vmem>>, %arg11: memref<16x256xf32, #tpu.memory_space<vmem>>, %arg12: memref<8x256xf32, #tpu.memory_space<vmem>>, %arg13: memref<1x256xf32, #tpu.memory_space<vmem>>, %arg14: memref<1x256xf32, #tpu.memory_space<vmem>>) attributes {dimension_semantics = [#tpu.dimension_semantics<parallel>], iteration_bounds = array<i64: 2>, scalar_prefetch = 0 : i64, scratch_operands = 5 : i64, tpu.core_type = #tpu.core_type<tc>, window_params = [{transform_indices = @transform_0, window_bounds = array<i64: 1, 16, 256>}, {pipeline_mode = #tpu.pipeline_mode<synchronous>, transform_indices = @transform_1, window_bounds = array<i64: 16, 1>}, {pipeline_mode = #tpu.pipeline_mode<synchronous>, transform_indices = @transform_2, window_bounds = array<i64: 16, 1>}, {pipeline_mode = #tpu.pipeline_mode<synchronous>, transform_indices = @transform_3, window_bounds = array<i64: 16, 16>}, {pipeline_mode = #tpu.pipeline_mode<synchronous>, transform_indices = @transform_4, window_bounds = array<i64: 48, 16>}, {pipeline_mode = #tpu.pipeline_mode<synchronous>, transform_indices = @transform_5, window_bounds = array<i64: 48, 1>}, {pipeline_mode = #tpu.pipeline_mode<synchronous>, transform_indices = @transform_6, window_bounds = array<i64: 16, 16>}, {pipeline_mode = #tpu.pipeline_mode<synchronous>, transform_indices = @transform_7, window_bounds = array<i64: 16, 1>}, {transform_indices = @transform_8, window_bounds = array<i64: 1, 16, 256>}]} {
    %c0 = arith.constant 0 : index
    %c0_0 = arith.constant 0 : index
    %c0_1 = arith.constant 0 : index
    %0 = vector.load %arg1[%c0, %c0_0, %c0_1] : memref<1x16x256xf32, #tpu.memory_space<vmem>>, vector<1x16x256xf32>
    %1 = vector.shape_cast %0 : vector<1x16x256xf32> to vector<16x256xf32>
    %cst = arith.constant dense<0.000000e+00> : vector<16xf32>
    %2 = vector.multi_reduction <add>, %1, %cst [1] : vector<16x256xf32> to vector<16xf32>
    %3 = vector.shape_cast %2 : vector<16xf32> to vector<16x1xf32>
    %4 = arith.mulf %1, %1 : vector<16x256xf32>
    %cst_2 = arith.constant dense<0.000000e+00> : vector<16xf32>
    %5 = vector.multi_reduction <add>, %4, %cst_2 [1] : vector<16x256xf32> to vector<16xf32>
    %6 = vector.shape_cast %5 : vector<16xf32> to vector<16x1xf32>
    %7 = tpu.concatenate %3, %6 in 1 : vector<16x1xf32>, vector<16x1xf32> -> vector<16x2xf32>
    %c0_3 = arith.constant 0 : index
    %c0_4 = arith.constant 0 : index
    %8 = vector.load %arg4[%c0_3, %c0_4] : memref<16x16xf32, #tpu.memory_space<vmem>>, vector<16x16xf32>
    %cst_5 = arith.constant dense<0.000000e+00> : vector<16x2xf32>
    %9 = tpu.matmul %8, %7, %cst_5 {dimension_numbers = #tpu.dot_dimension_numbers<[1], [0], [0], [1], [0, 0, 1, 1], [], []>} : vector<16x16xf32>, vector<16x2xf32>, vector<16x2xf32> -> vector<16x2xf32>
    %cst_6 = arith.constant 9.765625E-4 : f32
    %10 = vector.broadcast %cst_6 : f32 to vector<16x2xf32>
    %11 = arith.mulf %9, %10 : vector<16x2xf32>
    %12 = vector.extract_strided_slice %11 {offsets = [0, 0], sizes = [16, 1], strides = [1, 1]} : vector<16x2xf32> to vector<16x1xf32>
    %13 = vector.extract_strided_slice %11 {offsets = [0, 1], sizes = [16, 1], strides = [1, 1]} : vector<16x2xf32> to vector<16x1xf32>
    %14 = arith.mulf %12, %12 : vector<16x1xf32>
    %15 = arith.subf %13, %14 : vector<16x1xf32>
    %c0_7 = arith.constant 0 : index
    %c0_8 = arith.constant 0 : index
    %16 = vector.load %arg2[%c0_7, %c0_8] : memref<16x1xf32, #tpu.memory_space<vmem>>, vector<16x1xf32>
    %cst_9 = arith.constant 9.99999974E-6 : f32
    %17 = vector.broadcast %cst_9 : f32 to vector<16x1xf32>
    %18 = arith.addf %15, %17 : vector<16x1xf32>
    %19 = math.rsqrt %18 : vector<16x1xf32>
    %20 = arith.mulf %16, %19 : vector<16x1xf32>
    %c0_10 = arith.constant 0 : index
    %c0_11 = arith.constant 0 : index
    %21 = vector.load %arg3[%c0_10, %c0_11] : memref<16x1xf32, #tpu.memory_space<vmem>>, vector<16x1xf32>
    %22 = arith.mulf %12, %20 : vector<16x1xf32>
    %23 = arith.subf %21, %22 : vector<16x1xf32>
    %24 = vector.broadcast %20 : vector<16x1xf32> to vector<16x256xf32>
    %25 = arith.mulf %1, %24 : vector<16x256xf32>
    %26 = vector.broadcast %23 : vector<16x1xf32> to vector<16x256xf32>
    %27 = arith.addf %25, %26 : vector<16x256xf32>
    %c0_12 = arith.constant 0 : index
    %c0_13 = arith.constant 0 : index
    %28 = vector.load %arg5[%c0_12, %c0_13] : memref<48x16xf32, #tpu.memory_space<vmem>>, vector<48x16xf32>
    %cst_14 = arith.constant dense<0.000000e+00> : vector<48x256xf32>
    %29 = tpu.matmul %28, %27, %cst_14 {dimension_numbers = #tpu.dot_dimension_numbers<[1], [0], [0], [1], [0, 0, 1, 1], [], []>} : vector<48x16xf32>, vector<16x256xf32>, vector<48x256xf32> -> vector<48x256xf32>
    %c0_15 = arith.constant 0 : index
    %c0_16 = arith.constant 0 : index
    %30 = vector.load %arg6[%c0_15, %c0_16] : memref<48x1xf32, #tpu.memory_space<vmem>>, vector<48x1xf32>
    %31 = vector.broadcast %30 : vector<48x1xf32> to vector<48x256xf32>
    %32 = arith.addf %29, %31 : vector<48x256xf32>
    %c0_17 = arith.constant 0 : index
    %c0_18 = arith.constant 0 : index
    %33 = vector.load %arg10[%c0_17, %c0_18] : memref<48x256xf32, #tpu.memory_space<vmem>>, vector<48x256xf32>
    tpu.vector_store %arg10[%c0_17, %c0_18], %32 {strides = array<i32>} : memref<48x256xf32, #tpu.memory_space<vmem>>, vector<48x256xf32>,
    %c0_i32 = arith.constant 0 : i32
    %c1_i32 = arith.constant 1 : i32
    %34 = arith.muli %c0_i32, %c1_i32 : i32
    %c0_i32_19 = arith.constant 0 : i32
    %35 = arith.addi %c0_i32_19, %34 : i32
    %c8_i32 = arith.constant 8 : i32
    %36 = arith.muli %35, %c8_i32 : i32
    %37 = tpu.assume_multiple %36, 8 : i32
    %c8_i32_20 = arith.constant 8 : i32
    %38 = arith.muli %35, %c8_i32_20 : i32
    %c16_i32 = arith.constant 16 : i32
    %39 = arith.addi %c16_i32, %38 : i32
    %40 = tpu.assume_multiple %39, 8 : i32
    %c8_i32_21 = arith.constant 8 : i32
    %41 = arith.muli %35, %c8_i32_21 : i32
    %c32_i32 = arith.constant 32 : i32
    %42 = arith.addi %c32_i32, %41 : i32
    %43 = tpu.assume_multiple %42, 8 : i32
    %44 = arith.index_cast %37 : i32 to index
    %c0_22 = arith.constant 0 : index
    %45 = vector.load %arg10[%44, %c0_22] : memref<48x256xf32, #tpu.memory_space<vmem>>, vector<8x256xf32>
    %46 = arith.truncf %45 : vector<8x256xf32> to vector<8x256xbf16>
    %47 = arith.index_cast %40 : i32 to index
    %c0_23 = arith.constant 0 : index
    %48 = vector.load %arg10[%47, %c0_23] : memref<48x256xf32, #tpu.memory_space<vmem>>, vector<8x256xf32>
    %49 = arith.truncf %48 : vector<8x256xf32> to vector<8x256xbf16>
    %50 = arith.index_cast %43 : i32 to index
    %c0_24 = arith.constant 0 : index
    %51 = vector.load %arg10[%50, %c0_24] : memref<48x256xf32, #tpu.memory_space<vmem>>, vector<8x256xf32>
    %52 = arith.truncf %51 : vector<8x256xf32> to vector<8x256xbf16>
    %cst_25 = arith.constant dense<0.000000e+00> : vector<256x256xf32>
    %53 = tpu.matmul %49, %46, %cst_25 {dimension_numbers = #tpu.dot_dimension_numbers<[0], [0], [1], [1], [0, 1, 1, 1], [], []>} : vector<8x256xbf16>, vector<8x256xbf16>, vector<256x256xf32> -> vector<256x256xf32>
    %cst_26 = arith.constant dense<0xFF800000> : vector<256xf32>
    %54 = vector.multi_reduction <maximumf>, %53, %cst_26 [0] : vector<256x256xf32> to vector<256xf32>
    %55 = vector.shape_cast %54 : vector<256xf32> to vector<1x256xf32>
    %56 = vector.broadcast %55 : vector<1x256xf32> to vector<256x256xf32>
    %57 = arith.subf %53, %56 : vector<256x256xf32>
    %58 = math.exp %57 : vector<256x256xf32>
    %cst_27 = arith.constant dense<0.000000e+00> : vector<256xf32>
    %59 = vector.multi_reduction <add>, %58, %cst_27 [0] : vector<256x256xf32> to vector<256xf32>
    %60 = vector.shape_cast %59 : vector<256xf32> to vector<1x256xf32>
    %61 = arith.truncf %58 : vector<256x256xf32> to vector<256x256xbf16>
    %cst_28 = arith.constant dense<0.000000e+00> : vector<8x256xf32>
    %62 = tpu.matmul %52, %61, %cst_28 {dimension_numbers = #tpu.dot_dimension_numbers<[1], [0], [0], [1], [0, 0, 1, 1], [], []>} : vector<8x256xbf16>, vector<256x256xbf16>, vector<8x256xf32> -> vector<8x256xf32>
    %63 = tpu.reciprocal %60 {approx = true} : vector<1x256xf32> -> vector<1x256xf32>
    %64 = vector.broadcast %63 : vector<1x256xf32> to vector<8x256xf32>
    %65 = arith.mulf %62, %64 : vector<8x256xf32>
    %66 = arith.index_cast %37 : i32 to index
    %c0_29 = arith.constant 0 : index
    %67 = vector.load %arg11[%66, %c0_29] : memref<16x256xf32, #tpu.memory_space<vmem>>, vector<8x256xf32>
    tpu.vector_store %arg11[%66, %c0_29], %65 {strides = array<i32>} : memref<16x256xf32, #tpu.memory_space<vmem>>, vector<8x256xf32>,
    %c1_i32_30 = arith.constant 1 : i32
    %c1_i32_31 = arith.constant 1 : i32
    %68 = arith.muli %c1_i32_30, %c1_i32_31 : i32
    %c0_i32_32 = arith.constant 0 : i32
    %69 = arith.addi %c0_i32_32, %68 : i32
    %c8_i32_33 = arith.constant 8 : i32
    %70 = arith.muli %69, %c8_i32_33 : i32
    %71 = tpu.assume_multiple %70, 8 : i32
    %c8_i32_34 = arith.constant 8 : i32
    %72 = arith.muli %69, %c8_i32_34 : i32
    %c16_i32_35 = arith.constant 16 : i32
    %73 = arith.addi %c16_i32_35, %72 : i32
    %74 = tpu.assume_multiple %73, 8 : i32
    %c8_i32_36 = arith.constant 8 : i32
    %75 = arith.muli %69, %c8_i32_36 : i32
    %c32_i32_37 = arith.constant 32 : i32
    %76 = arith.addi %c32_i32_37, %75 : i32
    %77 = tpu.assume_multiple %76, 8 : i32
    %78 = arith.index_cast %71 : i32 to index
    %c0_38 = arith.constant 0 : index
    %79 = vector.load %arg10[%78, %c0_38] : memref<48x256xf32, #tpu.memory_space<vmem>>, vector<8x256xf32>
    %80 = arith.truncf %79 : vector<8x256xf32> to vector<8x256xbf16>
    %81 = arith.index_cast %74 : i32 to index
    %c0_39 = arith.constant 0 : index
    %82 = vector.load %arg10[%81, %c0_39] : memref<48x256xf32, #tpu.memory_space<vmem>>, vector<8x256xf32>
    %83 = arith.truncf %82 : vector<8x256xf32> to vector<8x256xbf16>
    %84 = arith.index_cast %77 : i32 to index
    %c0_40 = arith.constant 0 : index
    %85 = vector.load %arg10[%84, %c0_40] : memref<48x256xf32, #tpu.memory_space<vmem>>, vector<8x256xf32>
    %86 = arith.truncf %85 : vector<8x256xf32> to vector<8x256xbf16>
    %cst_41 = arith.constant dense<0.000000e+00> : vector<256x256xf32>
    %87 = tpu.matmul %83, %80, %cst_41 {dimension_numbers = #tpu.dot_dimension_numbers<[0], [0], [1], [1], [0, 1, 1, 1], [], []>} : vector<8x256xbf16>, vector<8x256xbf16>, vector<256x256xf32> -> vector<256x256xf32>
    %cst_42 = arith.constant dense<0xFF800000> : vector<256xf32>
    %88 = vector.multi_reduction <maximumf>, %87, %cst_42 [0] : vector<256x256xf32> to vector<256xf32>
    %89 = vector.shape_cast %88 : vector<256xf32> to vector<1x256xf32>
    %90 = vector.broadcast %89 : vector<1x256xf32> to vector<256x256xf32>
    %91 = arith.subf %87, %90 : vector<256x256xf32>
    %92 = math.exp %91 : vector<256x256xf32>
    %cst_43 = arith.constant dense<0.000000e+00> : vector<256xf32>
    %93 = vector.multi_reduction <add>, %92, %cst_43 [0] : vector<256x256xf32> to vector<256xf32>
    %94 = vector.shape_cast %93 : vector<256xf32> to vector<1x256xf32>
    %95 = arith.truncf %92 : vector<256x256xf32> to vector<256x256xbf16>
    %cst_44 = arith.constant dense<0.000000e+00> : vector<8x256xf32>
    %96 = tpu.matmul %86, %95, %cst_44 {dimension_numbers = #tpu.dot_dimension_numbers<[1], [0], [0], [1], [0, 0, 1, 1], [], []>} : vector<8x256xbf16>, vector<256x256xbf16>, vector<8x256xf32> -> vector<8x256xf32>
    %97 = tpu.reciprocal %94 {approx = true} : vector<1x256xf32> -> vector<1x256xf32>
    %98 = vector.broadcast %97 : vector<1x256xf32> to vector<8x256xf32>
    %99 = arith.mulf %96, %98 : vector<8x256xf32>
    %100 = arith.index_cast %71 : i32 to index
    %c0_45 = arith.constant 0 : index
    %101 = vector.load %arg11[%100, %c0_45] : memref<16x256xf32, #tpu.memory_space<vmem>>, vector<8x256xf32>
    tpu.vector_store %arg11[%100, %c0_45], %99 {strides = array<i32>} : memref<16x256xf32, #tpu.memory_space<vmem>>, vector<8x256xf32>,
    %c2_i32 = arith.constant 2 : i32
    %c0_46 = arith.constant 0 : index
    %c0_47 = arith.constant 0 : index
    %c0_48 = arith.constant 0 : index
    %102 = vector.load %arg1[%c0_46, %c0_47, %c0_48] : memref<1x16x256xf32, #tpu.memory_space<vmem>>, vector<1x16x256xf32>
    %103 = vector.shape_cast %102 : vector<1x16x256xf32> to vector<16x256xf32>
    %c0_49 = arith.constant 0 : index
    %c0_50 = arith.constant 0 : index
    %104 = vector.load %arg8[%c0_49, %c0_50] : memref<16x1xf32, #tpu.memory_space<vmem>>, vector<16x1xf32>
    %105 = vector.broadcast %104 : vector<16x1xf32> to vector<16x256xf32>
    %106 = arith.addf %103, %105 : vector<16x256xf32>
    %c0_51 = arith.constant 0 : index
    %c0_52 = arith.constant 0 : index
    %107 = vector.load %arg7[%c0_51, %c0_52] : memref<16x16xf32, #tpu.memory_space<vmem>>, vector<16x16xf32>
    %c0_53 = arith.constant 0 : index
    %c0_54 = arith.constant 0 : index
    %108 = vector.load %arg11[%c0_53, %c0_54] : memref<16x256xf32, #tpu.memory_space<vmem>>, vector<16x256xf32>
    %cst_55 = arith.constant dense<0.000000e+00> : vector<16x256xf32>
    %109 = tpu.matmul %107, %108, %cst_55 {dimension_numbers = #tpu.dot_dimension_numbers<[1], [0], [0], [1], [0, 0, 1, 1], [], []>} : vector<16x16xf32>, vector<16x256xf32>, vector<16x256xf32> -> vector<16x256xf32>
    %110 = arith.addf %106, %109 : vector<16x256xf32>
    %c0_56 = arith.constant 0 : index
    %c0_57 = arith.constant 0 : index
    %c0_58 = arith.constant 0 : index
    %111 = vector.load %arg9[%c0_56, %c0_57, %c0_58] : memref<1x16x256xf32, #tpu.memory_space<vmem>>, vector<1x16x256xf32>
    %112 = vector.shape_cast %111 : vector<1x16x256xf32> to vector<16x256xf32>
    %113 = vector.shape_cast %110 : vector<16x256xf32> to vector<1x16x256xf32>
    tpu.vector_store %arg9[%c0_56, %c0_57, %c0_58], %113 {strides = array<i32>} : memref<1x16x256xf32, #tpu.memory_space<vmem>>, vector<1x16x256xf32>,
    return
  }
  func.func @transform_0(%arg0: i32) -> (i32, i32, i32) {
    %c0_i32 = arith.constant 0 : i32
    %c0_i32_0 = arith.constant 0 : i32
    %c0_i32_1 = arith.constant 0 : i32
    return %arg0, %c0_i32, %c0_i32_0 : i32, i32, i32
  }
  func.func @transform_1(%arg0: i32) -> (i32, i32) {
    %c0_i32 = arith.constant 0 : i32
    %c0_i32_0 = arith.constant 0 : i32
    %c0_i32_1 = arith.constant 0 : i32
    return %c0_i32, %c0_i32_0 : i32, i32
  }
  func.func @transform_2(%arg0: i32) -> (i32, i32) {
    %c0_i32 = arith.constant 0 : i32
    %c0_i32_0 = arith.constant 0 : i32
    %c0_i32_1 = arith.constant 0 : i32
    return %c0_i32, %c0_i32_0 : i32, i32
  }
  func.func @transform_3(%arg0: i32) -> (i32, i32) {
    %c0_i32 = arith.constant 0 : i32
    %c0_i32_0 = arith.constant 0 : i32
    %c0_i32_1 = arith.constant 0 : i32
    return %c0_i32, %c0_i32_0 : i32, i32
  }
  func.func @transform_4(%arg0: i32) -> (i32, i32) {
    %c0_i32 = arith.constant 0 : i32
    %c0_i32_0 = arith.constant 0 : i32
    %c0_i32_1 = arith.constant 0 : i32
    return %c0_i32, %c0_i32_0 : i32, i32
  }
  func.func @transform_5(%arg0: i32) -> (i32, i32) {
    %c0_i32 = arith.constant 0 : i32
    %c0_i32_0 = arith.constant 0 : i32
    %c0_i32_1 = arith.constant 0 : i32
    return %c0_i32, %c0_i32_0 : i32, i32
  }
  func.func @transform_6(%arg0: i32) -> (i32, i32) {
    %c0_i32 = arith.constant 0 : i32
    %c0_i32_0 = arith.constant 0 : i32
    %c0_i32_1 = arith.constant 0 : i32
    return %c0_i32, %c0_i32_0 : i32, i32
  }
  func.func @transform_7(%arg0: i32) -> (i32, i32) {
    %c0_i32 = arith.constant 0 : i32
    %c0_i32_0 = arith.constant 0 : i32
    %c0_i32_1 = arith.constant 0 : i32
    return %c0_i32, %c0_i32_0 : i32, i32
  }
  func.func @transform_8(%arg0: i32) -> (i32, i32, i32) {
    %c0_i32 = arith.constant 0 : i32
    %c0_i32_0 = arith.constant 0 : i32
    %c0_i32_1 = arith.constant 0 : i32
    return %arg0, %c0_i32, %c0_i32_0 : i32, i32, i32
  }
}

</mosaic_0001>

<bundles_post_ra>
// kernel: tpu_custom_call.1
= control target key start
LH: loop header
LB: loop body
LE: loop exit
PB: predicated region body
PF: predicated region fallthrough
CT: control target
= control target key end

     0   :  { %13 = vsyncpa [#allocation8], 0  ;;  %s4086_s0 = inlined_call_operand.vmem [shape: f32[2,16,256], index: 0, kind: input, shape index: {}]   ;;  %s4087_s1 = inlined_call_operand.vmem [shape: f32[16,1], index: 1, kind: input, shape index: {}]   ;;  %s4088_s2 = inlined_call_operand.vmem [shape: f32[16,1], index: 2, kind: input, shape index: {}]   ;;  %s4089_s3 = inlined_call_operand.vmem [shape: f32[16,16], index: 3, kind: input, shape index: {}]   ;;  %s4090_s4 = inlined_call_operand.vmem [shape: f32[48,16], index: 4, kind: input, shape index: {}]   ;;  %s4091_s5 = inlined_call_operand.vmem [shape: f32[48,1], index: 5, kind: input, shape index: {}]   ;;  %s4092_s6 = inlined_call_operand.vmem [shape: f32[16,16], index: 6, kind: input, shape index: {}]   ;;  %s4093_s7 = inlined_call_operand.vmem [shape: f32[16,1], index: 7, kind: input, shape index: {}]   ;;  %s4094_s8 = inlined_call_operand.hbm [shape: f32[2,16,256], index: 8, kind: output, shape index: {}]  }
   0x1   :  { %15 = vsyncpa [#allocation8 + $0x1], 0  ;;  %s2707_s27 = smov 0   ;;  %s2709_s28 = smov 0  }
   0x2   :  { %s2711_s29 = smov 0   ;;  %s2713_s30 = smov 0  }
   0x3 LB: > { %s2728_s9 = sadd.s32 4294967295, %s2655_s30   ;;  %s2174_s10 = sadd.s32 4294967294, %s2655_s30   ;;  %s2655_s30 = sphi %s2713_s30, %s4257_s30   ;;  %s2651_s29 = sphi %s2711_s29, %s4256_s29   ;;  %s2647_s28 = sphi %s2709_s28, %s4255_s28   ;;  %s2643_s27 = sphi %s2707_s27, %s4254_s27  }
   0x4   : > { %s2732_s11 = sadd.s32 1, %s2655_s30   ;;  %s201_s12 = sadd.s32 1, %s2651_s29 }
   0x5   : > { %s198_s13 = ssub.s32 %s2655_s30, %s2732_s11  ;;  %p211_p0 = scmp.ne.s32.totalorder %s2651_s29, %s2647_s28 }
   0x6   : > { %p199_p1 = scmp.eq.s32.totalorder %s198_s13, 0  ;;  %p212_p2 = scmp.eq.s32.totalorder %s2728_s9, 1 }
   0x7   : > { %p217_p3 = scmp.ne.s32.totalorder %s2647_s28, %s2643_s27  ;;  %p218_p4 = scmp.eq.s32.totalorder %s2174_s10, 1 }
   0x8   : > { %s2743_s14 = scalar_select %p199_p1, %s2651_s29, %s201_s12  }
   0x9   : > { %p2745_p5 = por %p212_p2, %p211_p0  ;;  %p2749_p6 = por %p218_p4, %p217_p3 }
   0xa   : > { %p2177_p7 = scmp.ge.s32.totalorder %s2655_s30, 1  ;;  %p265_p8 = scmp.lt.s32.totalorder %s2655_s30, 3 }
   0xc   : > { %p266_p9 = pnand %p2177_p7, %p265_p8 }
   0xe   : > { %269 = sbr.rel (%p266_p9) target bundleno = 2269 (0x8dd), region = 52 }
  0x13   : > { %p299_p10 = scmp.lt.s32.totalorder %s2728_s9, 1  ;;  %vm325_vm0 = vcmask 7168   ;;  %v328_v17 = vld [vmem:[%s4089_s3] sm:$0xff]  ;;  %vm330_vm1 = vcmask 130048   ;;  %v329_v19 = vld [vmem:[%s4089_s3 + $0x8] sm:$0xff]  ;;  %s2657_s26 = smov 1  }
  0x14   : > { %s2658_s10 = smov 127   ;;  %v2659_v46 = vmov 0   ;;  %v374_v47 = vld [vmem:[%s4087_s1] sm:$0xff]  ;;  %v375_v53 = vld [vmem:[%s4087_s1 + $0x8] sm:$0xff]  ;;  %v451_v56 = vld [vmem:[%s4091_s5 + $0x18] sm:$0xff]  ;;  %vm678_vm8 = vcmask 1043456  }
  0x15   : > { %s300_s17 = scalar_select %p299_p10, %s2728_s9, 1  ;;  %2318 = vset.pattern.permute.xlu2 %v2659_v46  ;;  %2319 = vset.pattern.permute.xlu0 %v2659_v46  ;;  %v408_v50 = vld [vmem:[%s4088_s2] sm:$0xff]  ;;  %v409_v58 = vld [vmem:[%s4088_s2 + $0x8] sm:$0xff]  ;;  %v450_v60 = vld [vmem:[%s4091_s5 + $0x10] sm:$0xff]  ;;  %vm629_vm9 = vcmask 64512  }
  0x16   : > { %2320 = vset.pattern.permute.xlu1 %v2659_v46  ;;  %v448_v62 = vld [vmem:[%s4091_s5] sm:$0xff]  ;;  %s296_s19 = sand.u32 1, %s2647_s28   ;;  %s2269_s23 = sshll.u32 %s2728_s9, 5 }
  0x17   : > { %s2268_s18 = sshll.u32 %s300_s17, 5  ;;  %s2178_s20 = sshll.u32 %s296_s19, 5 }
  0x18   : > { %s2760_s21 = scalar_lea.vmem %s4086_s0, %s2268_s18  ;;  %s298_s22 = scalar_lea.vmem [#allocation7], %s2178_s20 }
  0x19   : > { %v2763_v0 = vld [vmem:[%s2760_s21 + $0x10] sm:$0xff]  ;;  %v2766_v1 = vld [vmem:[%s2760_s21 + $0x18] sm:$0xff]  ;;  %v2769_v2 = vld [vmem:[%s2760_s21] sm:$0xff]  ;;  %s2091_s13 = scalar_lea.sflag [#allocation8], %s296_s19 }
  0x1a   : > { %v312_v3 = vadd.f32 %v2766_v1, %v2763_v0  ;;  %v2774_v4 = vld [vmem:[%s2760_s21 + $0x8] sm:$0xff]  ;;  %v317_v6 = vmul.f32 %v2763_v0, %v2763_v0  ;;  %v318_v7 = vmul.f32 %v2766_v1, %v2766_v1  ;;  %v315_v8 = vmul.f32 %v2769_v2, %v2769_v2 }
  0x1b   : > { %v309_v5 = vadd.f32 %v2774_v4, %v2769_v2  ;;  %v316_v9 = vmul.f32 %v2774_v4, %v2774_v4 }
  0x1c   : > { %313 = vadd.xlane.f32.xlu0 %v312_v3  ;;  %v322_v10 = vadd.f32 %v318_v7, %v317_v6  ;;  %v452_v3 = vld [vmem:[%s4091_s5 + $0x20] sm:$0xff] }
  0x1d   : > { %310 = vadd.xlane.f32.xlu1 %v309_v5  ;;  %v319_v11 = vadd.f32 %v316_v9, %v315_v8 }
  0x24   : > { %323 = vadd.xlane.f32.xlu0 %v322_v10  ;;  %v449_v10 = vld [vmem:[%s4091_s5 + $0x8] sm:$0xff] }
  0x25   : > { %320 = vadd.xlane.f32.xlu1 %v319_v11 }
  0x8f   : > { %v314_v12 = vpop.xlane.xlu0 %313 }
  0x90   : > { %v311_v13 = vpop.xlane.xlu1 %310 }
  0x97   : > { %v324_v14 = vpop.xlane.xlu0 %323 }
  0x98   : > { %v321_v15 = vpop.xlane.xlu1 %320  ;;  %v327_v16 = vsel %vm325_vm0, %v314_v12, %v324_v14 }
  0x99   : > { %351 = vmatpush.msra.mxu0 %v327_v16  ;;  %v326_v18 = vsel %vm325_vm0, %v311_v13, %v321_v15  ;;  %v443_v15 = vld [vmem:[%s4090_s4 + $0x8] sm:$0xff]  ;;  %v446_v16 = vld [vmem:[%s4090_s4 + $0x20] sm:$0xff] }
  0x9b   : > { %352 = vmatpush.msra.mxu0 %v326_v18 }
  0x9c   : > { %2181 = vmatmul.msk.f32.vlgmr.msra.gmra.mxu0 %vm330_vm1, %v328_v17  ;;  %v453_v17 = vld [vmem:[%s4091_s5 + $0x28] sm:$0xff] }
  0xa4   : > { %2182 = vmatmul.msk.f32.gmra.mxu0 %vm330_vm1, %v329_v19 }
 0x119   : > { %v354_v20 = vpop.f32.mrf.mxu0 }
 0x11a   : > { %v360_v24 = vmul.f32 0.0009765625, %v354_v20 }
 0x11c   : > { %v362_v25 = vmul.f32 %v360_v24, %v360_v24 }
 0x121   : > { %v357_v21 = vpop.f32.mrf.mxu0 }
 0x122   : > { %v361_v22 = vmul.f32 0.0009765625, %v357_v21 }
 0x124   : > { %v363_v23 = vmul.f32 %v361_v22, %v361_v22 }
 0x126   : > { %368 = vrot.lane.b32.xlu2 %v363_v23, %s2657_s26  ;;  %v2008_v23 = vld [vmem:[%s4093_s7] sm:$0xff] }
 0x12e   : > { %366 = vrot.lane.b32.xlu2 %v362_v25, %s2657_s26  ;;  %s2102_s26 = scalar_lea.hbm %s4094_s8, %s2269_s23  ;;  %s2613_s23 = scalar_lea.hbm %s4094_s8, 64 }
 0x12f   : > { %s2105_s12 = sshll.u32 %s2102_s26, 4  ;;  %s2106_s12 = int_to_ptr.hbm [resolvable:$true] %s2105_s12 }
 0x130   : > { %s2607_s17 = sshra.s32 %s2106_s12, 4  ;;  %s2608_s17 = int_to_ptr.hbm [resolvable:$true] %s2607_s17 }
 0x131   : > { %s2609_s9 = scalar_lea.hbm %s2608_s17, 32  ;;  %p2614_p0 = scmp.lt.s32.totalorder %s2608_s17, %s4094_s8 }
 0x132   : > { %p2610_p11 = scmp.ne.s32.totalorder %s2608_s17, %s2609_s9  ;;  %p2615_p1 = scmp.lt.s32.totalorder %s2613_s23, %s2609_s9 }
 0x134   : > { %p2611_p12 = pnand %p2610_p11, %p2745_p5  ;;  %p2616_p2 = por %p2615_p1, %p2614_p0 }
 0x136   : > { %p2612_p13 = pneg %p2611_p12 }
 0x138   : > { %p2617_p3 = pnand %p2616_p2, %p2612_p13 }
 0x180   : > { %v369_v26 = vpop.permute.xlu2 %368 }
 0x181   : > { %v373_v27 = vsub.f32 %v361_v22, %v369_v26 }
 0x183   : > { %v377_v28 = vadd.f32 1e-05, %v373_v27  ;;  %v2009_v27 = vld [vmem:[%s4093_s7 + $0x8] sm:$0xff] }
 0x185   : > { %2321 = vrsqrt.f32 %v377_v28  ;;  %vm394_vm3 = vweird.f32 %v377_v28 }
 0x188   : > { %v367_v29 = vpop.permute.xlu2 %366 }
 0x189   : > { %v372_v30 = vsub.f32 %v360_v24, %v367_v29 }
 0x18b   : > { %v2322_v31 = vpop.eup %2321  ;;  %v376_v32 = vadd.f32 1e-05, %v372_v30 }
 0x18c   : > { %v389_v33 = vmul.f32 %v2322_v31, %v377_v28  ;;  %vm395_vm2 = vweird.f32 %v2322_v31 }
 0x18d   : > { %2323 = vrsqrt.f32 %v376_v32  ;;  %vm396_vm4 = vmor %vm394_vm3, %vm395_vm2  ;;  %vm384_vm6 = vweird.f32 %v376_v32 }
 0x18e   : > { %v390_v34 = vmul.f32 %v2322_v31, %v389_v33 }
 0x190   : > { %v391_v35 = vmul.f32 0.5, %v390_v34 }
 0x192   : > { %v392_v36 = vsub.f32 1.5, %v391_v35 }
 0x193   : > { %v2324_v37 = vpop.eup %2323 }
 0x194   : > { %v379_v38 = vmul.f32 %v2324_v37, %v376_v32  ;;  %v393_v39 = vmul.f32 %v2322_v31, %v392_v36  ;;  %vm385_vm5 = vweird.f32 %v2324_v37 }
 0x195   : > { %vm386_vm7 = vmor %vm384_vm6, %vm385_vm5 }
 0x196   : > { %v380_v40 = vmul.f32 %v2324_v37, %v379_v38  ;;  %v397_v41 = vsel %vm396_vm4, %v2322_v31, %v393_v39 }
 0x197   : > { %402 = vrot.lane.b32.xlu0 %v397_v41, %s2658_s10 }
 0x198   : > { %v381_v42 = vmul.f32 0.5, %v380_v40 }
 0x19a   : > { %v382_v43 = vsub.f32 1.5, %v381_v42 }
 0x19c   : > { %v383_v44 = vmul.f32 %v2324_v37, %v382_v43 }
 0x19e   : > { %v387_v45 = vsel %vm386_vm7, %v2324_v37, %v383_v44 }
 0x19f   : > { %400 = vrot.lane.b32.xlu1 %v387_v45, %s2658_s10  ;;  %s2103_s10 = sshll.u32 %s298_s22, 4  ;;  %s2104_s10 = int_to_ptr.vmem [resolvable:$true] %s2103_s10 }
 0x1a7   : > { %456 = vperm.xlu1 %2320, %v448_v62  }
 0x1af   : > { %476 = vperm.xlu1 %2320, %v452_v3  }
 0x1b7   : > { %461 = vperm.xlu1 %2320, %v449_v10  }
 0x1bf   : > { %481 = vperm.xlu1 %2320, %v453_v17  }
 0x1c7   : > { %2012 = vperm.xlu1 %2320, %v2008_v23  }
 0x1cf   : > { %2017 = vperm.xlu1 %2320, %v2009_v27  }
 0x209   : > { %v403_v54 = vpop.permute.xlu0 %402 }
 0x20a   : > { %v407_v55 = vmul.f32 %v403_v54, %v375_v53 }
 0x20c   : > { %v411_v57 = vmul.f32 %v407_v55, %v361_v22  ;;  %v447_v22 = vld [vmem:[%s4090_s4 + $0x28] sm:$0xff] }
 0x20e   : > { %v413_v59 = vsub.f32 %v409_v58, %v411_v57 }
 0x211   : > { %v401_v48 = vpop.permute.xlu1 %400 }
 0x212   : > { %v406_v49 = vmul.f32 %v401_v48, %v374_v47 }
 0x214   : > { %v410_v51 = vmul.f32 %v406_v49, %v360_v24  ;;  %416 = vperm.xlu2 %2318, %v406_v49  }
 0x216   : > { %v412_v52 = vsub.f32 %v408_v50, %v410_v51 }
 0x218   : > { %430 = vperm.xlu0 %2319, %v412_v52  }
 0x219   : > { %v457_v18 = vpop.permute.xlu1 %456 }
 0x21c   : > { %421 = vperm.xlu2 %2318, %v407_v55  }
 0x220   : > { %471 = vperm.xlu0 %2319, %v451_v56  }
 0x224   : > { %435 = vperm.xlu2 %2318, %v413_v59  }
 0x22c   : > { %466 = vperm.xlu2 %2318, %v450_v60  }
 0x26e   : > { %v417_v61 = vpop.permute.xlu2 %416 }
 0x26f   : > { %v424_v11 = vmul.f32 %v417_v61, %v2769_v2  ;;  %v425_v12 = vmul.f32 %v417_v61, %v2774_v4  ;;  %v444_v2 = vld [vmem:[%s4090_s4 + $0x10] sm:$0xff]  ;;  %v445_v4 = vld [vmem:[%s4090_s4 + $0x18] sm:$0xff] }
 0x276   : > { %v422_v63 = vpop.permute.xlu2 %421 }
 0x277   : > { %v426_v5 = vmul.f32 %v422_v63, %v2763_v0  ;;  %v427_v6 = vmul.f32 %v422_v63, %v2766_v1  ;;  %v442_v1 = vld [vmem:[%s4090_s4] sm:$0xff] }
 0x27e   : > { %v436_v7 = vpop.permute.xlu2 %435 }
 0x27f   : > { %v440_v8 = vadd.f32 %v436_v7, %v426_v5  ;;  %v441_v9 = vadd.f32 %v436_v7, %v427_v6 }
 0x281   : > { %516 = vmatpush.msra.mxu1 %v440_v8  ;;  %2270 = vmatpush.msra.mxu3 %v440_v8 }
 0x282   : > { %551 = vmatpush.msrb.mxu0 %v441_v9  ;;  %2272 = vmatpush.msra.mxu2 %v441_v9 }
 0x286   : > { %v467_v28 = vpop.permute.xlu2 %466 }
 0x28a   : > { %v431_v13 = vpop.permute.xlu0 %430 }
 0x28b   : > { %v438_v0 = vadd.f32 %v431_v13, %v424_v11  ;;  %v439_v14 = vadd.f32 %v431_v13, %v425_v12 }
 0x28d   : > { %517 = vmatpush.msra.mxu1 %v438_v0  ;;  %2271 = vmatpush.msra.mxu3 %v438_v0 }
 0x28e   : > { %552 = vmatpush.msrb.mxu0 %v439_v14  ;;  %2273 = vmatpush.msra.mxu2 %v439_v14 }
 0x28f   : > { %2183 = vmatmul.msk.f32.vlgmr.msra.gmra.mxu1 %vm330_vm1, %v442_v1  ;;  %2190 = vmatmul.msk.f32.vlgmr.msra.gmra.mxu2 %vm330_vm1, %v443_v15 }
 0x290   : > { %2189 = vmatmul.msk.f32.vlgmr.msrb.gmra.mxu0 %vm330_vm1, %v442_v1  ;;  %2187 = vmatmul.msk.f32.vlgmr.msra.gmra.mxu3 %vm330_vm1, %v446_v16 }
 0x292   : > { %v472_v35 = vpop.permute.xlu0 %471 }
 0x297   : > { %2184 = vmatmul.msk.f32.gmra.mxu1 %vm330_vm1, %v443_v15  ;;  %2191 = vmatmul.msk.f32.gmra.mxu2 %vm330_vm1, %v444_v2 }
 0x298   : > { %2188 = vmatmul.msk.f32.gmra.mxu3 %vm330_vm1, %v447_v22 }
 0x29f   : > { %2185 = vmatmul.msk.f32.gmra.mxu1 %vm330_vm1, %v444_v2  ;;  %2192 = vmatmul.msk.f32.gmra.mxu2 %vm330_vm1, %v445_v4 }
 0x2a7   : > { %2186 = vmatmul.msk.f32.gmra.mxu1 %vm330_vm1, %v445_v4  ;;  %2193 = vmatmul.msk.f32.gmra.mxu2 %vm330_vm1, %v446_v16 }
 0x2af   : > { %2194 = vmatmul.msk.f32.gmra.mxu2 %vm330_vm1, %v447_v22 }
 0x30c   : > { %v519_v19 = vpop.f32.mrf.mxu1 }
 0x30d   : > { %v520_v20 = vadd.f32 %v519_v19, %v457_v18  ;;  %v554_v42 = vpop.f32.mrf.mxu0 }
 0x30e   : > { %v555_v43 = vadd.f32 %v554_v42, %v457_v18 }
 0x30f   : > { %v589_v21 = vpack.c.bf16 %v520_v20, %v520_v20 }
 0x310   : > { %v590_v44 = vpack.c.bf16 %v555_v43, %v555_v43 }
 0x311   : > { %v680_v24 = vsel %vm678_vm8, %v589_v21, 0 }
 0x312   : > { %v2860_v25 = vpop.f32.mrf.mxu2  ;;  %692 = vmatpush.bf16.msrb.mxu3 %v680_v24  ;;  %v683_v45 = vsel %vm678_vm8, %v590_v44, 0 }
 0x313   : > { %4144 = vst [vmem:[#allocation10_spill] sm:$0xff] %v2860_v25  ;;  %781 = vmatpush.bf16.msra.mxu0 %v683_v45  ;;  %v2886_v61 = vpop.f32.mrf.mxu3 }
 0x314   : > { %v2864_v26 = vpop.f32.mrf.mxu1  ;;  %4146 = vst [vmem:[#allocation12_spill] sm:$0xff] %v2886_v61 }
 0x315   : > { %4145 = vst [vmem:[#allocation11_spill] sm:$0xff] %v2864_v26 }
 0x31a   : > { %v560_v29 = vpop.f32.mrf.mxu2 }
 0x31b   : > { %v561_v30 = vadd.f32 %v560_v29, %v467_v28  ;;  %v2888_v62 = vpop.f32.mrf.mxu3 }
 0x31c   : > { %v525_v31 = vpop.f32.mrf.mxu1  ;;  %4147 = vst [vmem:[#allocation13_spill] sm:$0xff] %v2888_v62 }
 0x31d   : > { %v526_v32 = vadd.f32 %v525_v31, %v467_v28  ;;  %v597_v33 = vpack.c.bf16 %v561_v30, %v561_v30 }
 0x31f   : > { %v596_v34 = vpack.c.bf16 %v526_v32, %v526_v32 }
 0x321   : > { %605 = vxpose.binary.xlu2.c.b16.start.end [1/2] (short) %v597_v33, %v596_v34, 128 }
 0x322   : > { %v563_v36 = vpop.f32.mrf.mxu2 }
 0x323   : > { %v564_v37 = vadd.f32 %v563_v36, %v472_v35 }
 0x324   : > { %v528_v38 = vpop.f32.mrf.mxu1 }
 0x325   : > { %v529_v39 = vadd.f32 %v528_v38, %v472_v35  ;;  %v1308_v40 = vpack.c.bf16 %v564_v37, %v564_v37 }
 0x327   : > { %v1307_v41 = vpack.c.bf16 %v529_v39, %v529_v39 }
 0x329   : > { %1316 = vxpose.binary.xlu0.c.b16.start.end [1/2] (short) %v1308_v40, %v1307_v41, 128 }
 0x3c2   : > { %v613_v46 = vpop.trf.xlu2 }
 0x3c3   : > { %2195 = vmatmul.msk.bf16.vlgmr.msrb.gmra.mxu3 %vm629_vm9, %v613_v46  ;;  %2211 = vmatmul.msk.bf16.vlgmr.msra.gmra.mxu0 %vm629_vm9, %v613_v46 }
 0x3ca   : > { %v614_v47 = vpop.trf.xlu2 }
 0x3d2   : > { %v615_v48 = vpop.trf.xlu2 }
 0x3d3   : > { %2196 = vmatmul.msk.bf16.gmra.mxu3 %vm629_vm9, %v615_v48  ;;  %2212 = vmatmul.msk.bf16.gmra.mxu0 %vm629_vm9, %v615_v48 }
 0x3da   : > { %v616_v49 = vpop.trf.xlu2 }
 0x3e2   : > { %v617_v50 = vpop.trf.xlu2 }
 0x3e3   : > { %2197 = vmatmul.msk.bf16.gmra.mxu3 %vm629_vm9, %v617_v50  ;;  %2213 = vmatmul.msk.bf16.gmra.mxu0 %vm629_vm9, %v617_v50 }
 0x3ea   : > { %v618_v51 = vpop.trf.xlu2 }
 0x3f2   : > { %v619_v52 = vpop.trf.xlu2 }
 0x3f3   : > { %2198 = vmatmul.msk.bf16.gmra.mxu3 %vm629_vm9, %v619_v52  ;;  %2214 = vmatmul.msk.bf16.gmra.mxu0 %vm629_vm9, %v619_v52 }
 0x3fa   : > { %v620_v53 = vpop.trf.xlu2 }
 0x402   : > { %v621_v54 = vpop.trf.xlu2 }
 0x403   : > { %2199 = vmatmul.msk.bf16.gmra.mxu3 %vm629_vm9, %v621_v54  ;;  %2215 = vmatmul.msk.bf16.gmra.mxu0 %vm629_vm9, %v621_v54 }
 0x40a   : > { %v622_v55 = vpop.trf.xlu2 }
 0x412   : > { %v623_v56 = vpop.trf.xlu2 }
 0x413   : > { %2200 = vmatmul.msk.bf16.gmra.mxu3 %vm629_vm9, %v623_v56  ;;  %2216 = vmatmul.msk.bf16.gmra.mxu0 %vm629_vm9, %v623_v56 }
 0x41a   : > { %v624_v57 = vpop.trf.xlu2 }
 0x422   : > { %v625_v58 = vpop.trf.xlu2 }
 0x423   : > { %2201 = vmatmul.msk.bf16.gmra.mxu3 %vm629_vm9, %v625_v58  ;;  %2217 = vmatmul.msk.bf16.gmra.mxu0 %vm629_vm9, %v625_v58 }
 0x42a   : > { %v626_v59 = vpop.trf.xlu2 }
 0x432   : > { %v627_v60 = vpop.trf.xlu2 }
 0x433   : > { %2202 = vmatmul.msk.bf16.gmra.mxu3 %vm629_vm9, %v627_v60  ;;  %2218 = vmatmul.msk.bf16.gmra.mxu0 %vm629_vm9, %v627_v60 }
 0x43a   : > { %v628_v30 = vpop.trf.xlu2 }
 0x440   : > { %v2890_v63 = vpop.f32.mrf.mxu0 }
 0x443   : > { %2203 = vmatmul.msk.bf16.gmra.mxu3 %vm629_vm9, %v614_v47  ;;  %2219 = vmatmul.msk.bf16.gmra.mxu0 %vm629_vm9, %v614_v47 }
 0x446   : > { %v2894_v3 = vpop.f32.mrf.mxu3 }
 0x448   : > { %v2896_v5 = vpop.f32.mrf.mxu0 }
 0x44e   : > { %v2898_v6 = vpop.f32.mrf.mxu3 }
 0x44f   : > { %4148 = vst [vmem:[#allocation14_spill] sm:$0xff] %v2898_v6 }
 0x450   : > { %v2900_v7 = vpop.f32.mrf.mxu0 }
 0x451   : > { %4149 = vst [vmem:[#allocation15_spill] sm:$0xff] %v2900_v7 }
 0x453   : > { %2204 = vmatmul.msk.bf16.gmra.mxu3 %vm629_vm9, %v616_v49  ;;  %2220 = vmatmul.msk.bf16.gmra.mxu0 %vm629_vm9, %v616_v49 }
 0x456   : > { %v2904_v8 = vpop.f32.mrf.mxu3 }
 0x457   : > { %4150 = vst [vmem:[#allocation16_spill] sm:$0xff] %v2904_v8 }
 0x458   : > { %v2906_v9 = vpop.f32.mrf.mxu0 }
 0x459   : > { %4151 = vst [vmem:[#allocation17_spill] sm:$0xff] %v2906_v9  ;;  %v901_v58 = vmax.f32 %v2896_v5, %v2906_v9 }
 0x45e   : > { %v2908_v10 = vpop.f32.mrf.mxu3 }
 0x45f   : > { %4152 = vst [vmem:[#allocation18_spill] sm:$0xff] %v2908_v10 }
 0x460   : > { %v2910_v11 = vpop.f32.mrf.mxu0 }
 0x463   : > { %2205 = vmatmul.msk.bf16.gmra.mxu3 %vm629_vm9, %v618_v51  ;;  %2221 = vmatmul.msk.bf16.gmra.mxu0 %vm629_vm9, %v618_v51 }
 0x466   : > { %v2914_v12 = vpop.f32.mrf.mxu3 }
 0x468   : > { %v2916_v13 = vpop.f32.mrf.mxu0 }
 0x469   : > { %4153 = vst [vmem:[#allocation19_spill] sm:$0xff] %v2916_v13  ;;  %v903_v60 = vmax.f32 %v901_v58, %v2916_v13 }
 0x46e   : > { %v2918_v0 = vpop.f32.mrf.mxu3 }
 0x46f   : > { %4154 = vst [vmem:[#allocation20_spill] sm:$0xff] %v2918_v0 }
 0x470   : > { %v2920_v14 = vpop.f32.mrf.mxu0 }
 0x473   : > { %2206 = vmatmul.msk.bf16.gmra.mxu3 %vm629_vm9, %v620_v53  ;;  %2222 = vmatmul.msk.bf16.gmra.mxu0 %vm629_vm9, %v620_v53 }
 0x476   : > { %v2924_v1 = vpop.f32.mrf.mxu3 }
 0x478   : > { %v2926_v15 = vpop.f32.mrf.mxu0 }
 0x479   : > { %4155 = vst [vmem:[#allocation21_spill] sm:$0xff] %v2926_v15  ;;  %v905_v25 = vmax.f32 %v903_v60, %v2926_v15 }
 0x47e   : > { %v2928_v2 = vpop.f32.mrf.mxu3 }
 0x47f   : > { %4156 = vst [vmem:[#allocation22_spill] sm:$0xff] %v2928_v2 }
 0x480   : > { %v2930_v4 = vpop.f32.mrf.mxu0 }
 0x481   : > { %4157 = vst [vmem:[#allocation23_spill] sm:$0xff] %v2930_v4 }
 0x483   : > { %2207 = vmatmul.msk.bf16.gmra.mxu3 %vm629_vm9, %v622_v55  ;;  %2223 = vmatmul.msk.bf16.gmra.mxu0 %vm629_vm9, %v622_v55 }
 0x486   : > { %v2934_v16 = vpop.f32.mrf.mxu3 }
 0x488   : > { %v2936_v17 = vpop.f32.mrf.mxu0 }
 0x48e   : > { %v2938_v18 = vpop.f32.mrf.mxu3 }
 0x490   : > { %v2940_v19 = vpop.f32.mrf.mxu0 }
 0x493   : > { %2208 = vmatmul.msk.bf16.gmra.mxu3 %vm629_vm9, %v624_v57  ;;  %2224 = vmatmul.msk.bf16.gmra.mxu0 %vm629_vm9, %v624_v57  ;;  %v900_v57 = vmax.f32 %v2890_v63, %v2900_v7 }
 0x496   : > { %v2944_v20 = vpop.f32.mrf.mxu3 }
 0x498   : > { %v2946_v21 = vpop.f32.mrf.mxu0 }
 0x49e   : > { %v2948_v22 = vpop.f32.mrf.mxu3 }
 0x4a0   : > { %v2950_v23 = vpop.f32.mrf.mxu0 }
 0x4a3   : > { %2209 = vmatmul.msk.bf16.gmra.mxu3 %vm629_vm9, %v626_v59  ;;  %2225 = vmatmul.msk.bf16.gmra.mxu0 %vm629_vm9, %v626_v59  ;;  %v902_v59 = vmax.f32 %v900_v57, %v2910_v11 }
 0x4a5   : > { %v904_v62 = vmax.f32 %v902_v59, %v2920_v14 }
 0x4a6   : > { %v2954_v24 = vpop.f32.mrf.mxu3 }
 0x4a7   : > { %v906_v61 = vmax.f32 %v904_v62, %v2930_v4 }
 0x4a8   : > { %v2956_v27 = vpop.f32.mrf.mxu0 }
 0x4a9   : > { %v908_v7 = vmax.f32 %v906_v61, %v2940_v19 }
 0x4ab   : > { %v910_v57 = vmax.f32 %v908_v7, %v2950_v23 }
 0x4ae   : > { %v2958_v28 = vpop.f32.mrf.mxu3 }
 0x4b0   : > { %v2960_v29 = vpop.f32.mrf.mxu0 }
 0x4b1   : > { %v912_v59 = vmax.f32 %v910_v57, %v2960_v29 }
 0x4b3   : > { %2210 = vmatmul.msk.bf16.gmra.mxu3 %vm629_vm9, %v628_v30  ;;  %2226 = vmatmul.msk.bf16.gmra.mxu0 %vm629_vm9, %v628_v30 }
 0x4b6   : > { %v2964_v31 = vpop.f32.mrf.mxu3 }
 0x4b8   : > { %v2966_v32 = vpop.f32.mrf.mxu0 }
 0x4be   : > { %v2968_v33 = vpop.f32.mrf.mxu3 }
 0x4c0   : > { %v2970_v34 = vpop.f32.mrf.mxu0 }
 0x4c1   : > { %v914_v15 = vmax.f32 %v912_v59, %v2970_v34 }
 0x4c6   : > { %v2972_v35 = vpop.f32.mrf.mxu3 }
 0x4c8   : > { %v2974_v36 = vpop.f32.mrf.mxu0 }
 0x4ce   : > { %v2976_v37 = vpop.f32.mrf.mxu3 }
 0x4cf   : > { %4158 = vst [vmem:[#allocation24_spill] sm:$0xff] %v2976_v37 }
 0x4d0   : > { %v2978_v38 = vpop.f32.mrf.mxu0 }
 0x4d6   : > { %v2980_v39 = vpop.f32.mrf.mxu3 }
 0x4d8   : > { %v2982_v40 = vpop.f32.mrf.mxu0 }
 0x4de   : > { %v2984_v41 = vpop.f32.mrf.mxu3 }
 0x4e0   : > { %v2986_v42 = vpop.f32.mrf.mxu0 }
 0x4e6   : > { %v2988_v43 = vpop.f32.mrf.mxu3 }
 0x4e8   : > { %v2990_v44 = vpop.f32.mrf.mxu0 }
 0x4e9   : > { %4159 = vst [vmem:[#allocation25_spill] sm:$0xff] %v2990_v44 }
 0x4ee   : > { %v2992_v45 = vpop.f32.mrf.mxu3 }
 0x4ef   : > { %4160 = vst [vmem:[#allocation26_spill] sm:$0xff] %v2992_v45 }
 0x4f0   : > { %v2994_v46 = vpop.f32.mrf.mxu0 }
 0x4f6   : > { %v2996_v47 = vpop.f32.mrf.mxu3 }
 0x4f7   : > { %4161 = vst [vmem:[#allocation27_spill] sm:$0xff] %v2996_v47 }
 0x4f8   : > { %v2998_v48 = vpop.f32.mrf.mxu0 }
 0x4fe   : > { %v3000_v49 = vpop.f32.mrf.mxu3 }
 0x4ff   : > { %4162 = vst [vmem:[#allocation28_spill] sm:$0xff] %v3000_v49 }
 0x500   : > { %v3002_v50 = vpop.f32.mrf.mxu0 }
 0x506   : > { %v3004_v51 = vpop.f32.mrf.mxu3 }
 0x508   : > { %v3006_v52 = vpop.f32.mrf.mxu0 }
 0x50e   : > { %v3008_v53 = vpop.f32.mrf.mxu3 }
 0x510   : > { %v3010_v54 = vpop.f32.mrf.mxu0 }
 0x516   : > { %v3012_v55 = vpop.f32.mrf.mxu3 }
 0x517   : > { %4163 = vst [vmem:[#allocation29_spill] sm:$0xff] %v3012_v55  ;;  %v907_v55 = vmax.f32 %v905_v25, %v2936_v17  ;;  %v916_v25 = vmax.f32 %v914_v15, %v2978_v38 }
 0x518   : > { %v3014_v56 = vpop.f32.mrf.mxu0 }
 0x519   : > { %v909_v9 = vmax.f32 %v907_v55, %v2946_v21  ;;  %v918_v7 = vmax.f32 %v916_v25, %v2986_v42  ;;  %v864_v55 = vmax.f32 %v2898_v6, %v2908_v10 }
 0x51b   : > { %v911_v58 = vmax.f32 %v909_v9, %v2956_v27  ;;  %v866_v15 = vmax.f32 %v864_v55, %v2918_v0 }
 0x51d   : > { %v913_v60 = vmax.f32 %v911_v58, %v2966_v32  ;;  %v920_v58 = vmax.f32 %v918_v7, %v2994_v46 }
 0x51e   : > { %v3026_v26 = vpop.f32.mrf.mxu3 }
 0x51f   : > { %v915_v62 = vmax.f32 %v913_v60, %v2974_v36  ;;  %v863_v60 = vmax.f32 %v2894_v3, %v2904_v8 }
 0x520   : > { %v3022_v30 = vpop.f32.mrf.mxu0 }
 0x521   : > { %4164 = vst [vmem:[#allocation30_spill] sm:$0xff] %v3022_v30  ;;  %v917_v61 = vmax.f32 %v915_v62, %v2982_v40  ;;  %v922_v62 = vmax.f32 %v920_v58, %v3002_v50 }
 0x523   : > { %v919_v9 = vmax.f32 %v917_v61, %v2990_v44  ;;  %v865_v61 = vmax.f32 %v863_v60, %v2914_v12  ;;  %v868_v44 = vmax.f32 %v866_v15, %v2928_v2  ;;  %v924_v10 = vmax.f32 %v922_v62, %v3010_v54 }
 0x525   : > { %v921_v59 = vmax.f32 %v919_v9, %v2998_v48  ;;  %v867_v9 = vmax.f32 %v865_v61, %v2924_v1  ;;  %v870_v8 = vmax.f32 %v868_v44, %v2938_v18  ;;  %v926_v55 = vmax.f32 %v924_v10, %v3022_v30 }
 0x526   : > { %v3040_v4 = vpop.f32.mrf.mxu3 }
 0x527   : > { %v923_v25 = vmax.f32 %v921_v59, %v3006_v52  ;;  %v869_v59 = vmax.f32 %v867_v9, %v2934_v16  ;;  %v872_v60 = vmax.f32 %v870_v8, %v2948_v22 }
 0x528   : > { %v3034_v13 = vpop.f32.mrf.mxu0 }
 0x529   : > { %4165 = vst [vmem:[#allocation31_spill] sm:$0xff] %v3034_v13  ;;  %v925_v6 = vmax.f32 %v923_v25, %v3014_v56  ;;  %v871_v25 = vmax.f32 %v869_v59, %v2944_v20  ;;  %v874_v61 = vmax.f32 %v872_v60, %v2958_v28 }
 0x52b   : > { %v927_v58 = vmax.f32 %v925_v6, %v3034_v13  ;;  %v873_v44 = vmax.f32 %v871_v25, %v2954_v24  ;;  %v876_v10 = vmax.f32 %v874_v61, %v2968_v33 }
 0x52d   : > { %v875_v9 = vmax.f32 %v873_v44, %v2964_v31  ;;  %v878_v8 = vmax.f32 %v876_v10, %v2976_v37 }
 0x52e   : > { %v3061_v7 = vpop.f32.mrf.mxu3 }
 0x530   : > { %v3048_v57 = vpop.f32.mrf.mxu0 }
 0x531   : > { %v928_v15 = vmax.f32 %v926_v55, %v3048_v57  ;;  %v877_v55 = vmax.f32 %v875_v9, %v2972_v35 }
 0x533   : > { %v879_v60 = vmax.f32 %v877_v55, %v2980_v39  ;;  %v4166_v55 = vld [vmem:[#allocation29_spill] sm:$0xff] }
 0x535   : > { %v881_v25 = vmax.f32 %v879_v60, %v2988_v43 }
 0x536   : > { %v3079_v13 = vpop.f32.mrf.mxu3 }
 0x537   : > { %v883_v10 = vmax.f32 %v881_v25, %v2996_v47 }
 0x538   : > { %v3069_v0 = vpop.f32.mrf.mxu0 }
 0x539   : > { %v929_v62 = vmax.f32 %v927_v58, %v3069_v0  ;;  %v880_v58 = vmax.f32 %v878_v8, %v2984_v41 }
 0x53b   : > { %v930_v2 = vmax.f32 %v928_v15, %v929_v62  ;;  %v882_v15 = vmax.f32 %v880_v58, %v2992_v45 }
 0x53d   : > { %v931_v6 = vrot.slane %v930_v2, 4  ;;  %v884_v61 = vmax.f32 %v882_v15, %v3000_v49 }
 0x53e   : > { %v3093_v8 = vpop.f32.mrf.mxu3 }
 0x53f   : > { %v932_v30 = vmax.f32 %v930_v2, %v931_v6  ;;  %v886_v37 = vmax.f32 %v884_v61, %v3008_v53  ;;  %v885_v2 = vmax.f32 %v883_v10, %v3004_v51 }
 0x541   : > { %v933_v59 = vrot.slane %v932_v30, 2  ;;  %v888_v6 = vmax.f32 %v886_v37, %v3026_v26  ;;  %v887_v58 = vmax.f32 %v885_v2, %v4166_v55 }
 0x543   : > { %v934_v62 = vmax.f32 %v932_v30, %v933_v59  ;;  %v890_v30 = vmax.f32 %v888_v6, %v3061_v7  ;;  %v889_v59 = vmax.f32 %v887_v58, %v3040_v4 }
 0x545   : > { %v935_v44 = vrot.slane %v934_v62, 1  ;;  %v892_v60 = vmax.f32 %v890_v30, %v3093_v8  ;;  %v891_v37 = vmax.f32 %v889_v59, %v3079_v13 }
 0x547   : > { %v3091_v9 = vmax.f32 %v934_v62, %v935_v44  ;;  %v4167_v62 = vld [vmem:[#allocation15_spill] sm:$0xff]  ;;  %v4168_v44 = vld [vmem:[#allocation17_spill] sm:$0xff]  ;;  %v893_v2 = vmax.f32 %v891_v37, %v892_v60 }
 0x548   : > { %v4170_v60 = vld [vmem:[#allocation21_spill] sm:$0xff] }
 0x549   : > { %v938_v15 = vsub.f32 %v2890_v63, %v3091_v9  ;;  %v940_v25 = vsub.f32 %v2896_v5, %v3091_v9  ;;  %v942_v61 = vsub.f32 %v4167_v62, %v3091_v9  ;;  %v944_v10 = vsub.f32 %v4168_v44, %v3091_v9  ;;  %v4169_v63 = vld [vmem:[#allocation19_spill] sm:$0xff] }
 0x54a   : > { %v946_v58 = vsub.f32 %v2910_v11, %v3091_v9  ;;  %v948_v47 = vsub.f32 %v4169_v63, %v3091_v9  ;;  %v894_v59 = vrot.slane %v893_v2, 4  ;;  %v950_v62 = vsub.f32 %v2920_v14, %v3091_v9  ;;  %v4173_v44 = vld [vmem:[#allocation23_spill] sm:$0xff] }
 0x54b   : > { %v1003_v6 = vmul.f32 1.442695, %v938_v15  ;;  %v1007_v49 = vmul.f32 1.442695, %v940_v25  ;;  %v1011_v30 = vmul.f32 1.442695, %v942_v61  ;;  %v952_v15 = vsub.f32 %v4170_v60, %v3091_v9 }
 0x54c   : > { %v1015_v5 = vmul.f32 1.442695, %v944_v10  ;;  %v1019_v45 = vmul.f32 1.442695, %v946_v58  ;;  %v1023_v25 = vmul.f32 1.442695, %v948_v47  ;;  %v895_v37 = vmax.f32 %v893_v2, %v894_v59 }
 0x54d   : > { %2325 = vpow2.f32 %v1003_v6  ;;  %v1027_v10 = vmul.f32 1.442695, %v950_v62  ;;  %v956_v58 = vsub.f32 %v2936_v17, %v3091_v9  ;;  %v1031_v47 = vmul.f32 1.442695, %v952_v15 }
 0x54e   : > { %2327 = vpow2.f32 %v1007_v49  ;;  %v954_v49 = vsub.f32 %v4173_v44, %v3091_v9  ;;  %v896_v2 = vrot.slane %v895_v37, 2  ;;  %v960_v59 = vsub.f32 %v2946_v21, %v3091_v9 }
 0x54f   : > { %2329 = vpow2.f32 %v1011_v30  ;;  %v962_v17 = vsub.f32 %v2950_v23, %v3091_v9  ;;  %v1039_v15 = vmul.f32 1.442695, %v956_v58  ;;  %v964_v44 = vsub.f32 %v2956_v27, %v3091_v9 }
 0x550   : > { %2331 = vpow2.f32 %v1015_v5  ;;  %v958_v5 = vsub.f32 %v2940_v19, %v3091_v9  ;;  %v966_v21 = vsub.f32 %v2960_v29, %v3091_v9  ;;  %v970_v27 = vsub.f32 %v2970_v34, %v3091_v9 }
 0x551   : > { %2333 = vpow2.f32 %v1019_v45  ;;  %v1035_v45 = vmul.f32 1.442695, %v954_v49  ;;  %v1055_v29 = vmul.f32 1.442695, %v964_v44 }
 0x552   : > { %2335 = vpow2.f32 %v1023_v25  ;;  %v897_v25 = vmax.f32 %v895_v37, %v896_v2  ;;  %v1043_v49 = vmul.f32 1.442695, %v958_v5  ;;  %v1051_v37 = vmul.f32 1.442695, %v962_v17 }
 0x553   : > { %v3116_v11 = vpop.eup %2325  ;;  %2337 = vpow2.f32 %v1027_v10  ;;  %v972_v2 = vsub.f32 %v2974_v36, %v3091_v9  ;;  %v978_v36 = vsub.f32 %v2986_v42, %v3091_v9  ;;  %v1067_v44 = vmul.f32 1.442695, %v970_v27 }
 0x554   : > { %4171 = vst [vmem:[#allocation29_spill] sm:$0xff] %v3116_v11  ;;  %v3118_v61 = vpop.eup %2327  ;;  %2339 = vpow2.f32 %v1031_v47  ;;  %v898_v47 = vrot.slane %v897_v25, 1 }
 0x555   : > { %4172 = vst [vmem:[#allocation15_spill] sm:$0xff] %v3118_v61  ;;  %v1166_v14 = vadd.f32 %v3118_v61, %v3116_v11  ;;  %v3124_v6 = vpop.eup %2329  ;;  %2341 = vpow2.f32 %v1035_v45 }
 0x556   : > { %v3129_v63 = vpop.eup %2331  ;;  %2343 = vpow2.f32 %v1039_v15 }
 0x557   : > { %v1167_v30 = vadd.f32 %v3124_v6, %v1166_v14  ;;  %v3136_v60 = vpop.eup %2333  ;;  %v968_v14 = vsub.f32 %v2966_v32, %v3091_v9  ;;  %v974_v32 = vsub.f32 %v2978_v38, %v3091_v9  ;;  %2345 = vpow2.f32 %v1043_v49  ;;  %v4174_v38 = vld [vmem:[#allocation25_spill] sm:$0xff] }
 0x558   : > { %v3143_v10 = vpop.eup %2335  ;;  %v980_v49 = vsub.f32 %v4174_v38, %v3091_v9  ;;  %v992_v38 = vsub.f32 %v3014_v56, %v3091_v9 }
 0x559   : > { %v1168_v62 = vadd.f32 %v3129_v63, %v1167_v30  ;;  %v1047_v30 = vmul.f32 1.442695, %v960_v59  ;;  %v3150_v58 = vpop.eup %2337  ;;  %v1059_v59 = vmul.f32 1.442695, %v966_v21  ;;  %v1063_v34 = vmul.f32 1.442695, %v968_v14 }
 0x55a   : > { %v3157_v45 = vpop.eup %2339  ;;  %v1071_v21 = vmul.f32 1.442695, %v972_v2  ;;  %v982_v14 = vsub.f32 %v2994_v46, %v3091_v9  ;;  %v1087_v46 = vmul.f32 1.442695, %v980_v49  ;;  %v4176_v49 = vld [vmem:[#allocation16_spill] sm:$0xff] }
 0x55b   : > { %v1169_v19 = vadd.f32 %v3136_v60, %v1168_v62  ;;  %v976_v62 = vsub.f32 %v2982_v40, %v3091_v9  ;;  %2347 = vpow2.f32 %v1047_v30  ;;  %v3164_v15 = vpop.eup %2341 }
 0x55c   : > { %2349 = vpow2.f32 %v1051_v37  ;;  %v3173_v30 = vpop.eup %2343  ;;  %v984_v37 = vsub.f32 %v2998_v48, %v3091_v9  ;;  %v1091_v48 = vmul.f32 1.442695, %v982_v14 }
 0x55d   : > { %v1170_v23 = vadd.f32 %v3143_v10, %v1169_v19  ;;  %v3168_v19 = vmax.f32 %v897_v25, %v898_v47  ;;  %2351 = vpow2.f32 %v1055_v29  ;;  %v1079_v42 = vmul.f32 1.442695, %v976_v62  ;;  %v3178_v25 = vpop.eup %2345 }
 0x55e   : > { %2353 = vpow2.f32 %v1059_v59  ;;  %v1083_v47 = vmul.f32 1.442695, %v978_v36  ;;  %v1095_v14 = vmul.f32 1.442695, %v984_v37 }
 0x55f   : > { %v1171_v5 = vadd.f32 %v3150_v58, %v1170_v23  ;;  %v1075_v23 = vmul.f32 1.442695, %v974_v32  ;;  %2355 = vpow2.f32 %v1063_v34  ;;  %v937_v2 = vsub.f32 %v2894_v3, %v3168_v19  ;;  %v4175_v32 = vld [vmem:[#allocation14_spill] sm:$0xff] }
 0x560   : > { %2357 = vpow2.f32 %v1067_v44  ;;  %v939_v59 = vsub.f32 %v4175_v32, %v3168_v19  ;;  %v986_v34 = vsub.f32 %v3002_v50, %v3091_v9  ;;  %v990_v3 = vsub.f32 %v3010_v54, %v3091_v9 }
 0x561   : > { %v1172_v17 = vadd.f32 %v3157_v45, %v1171_v5  ;;  %v3184_v29 = vpop.eup %2347  ;;  %2359 = vpow2.f32 %v1071_v21  ;;  %v941_v21 = vsub.f32 %v4176_v49, %v3168_v19  ;;  %v1001_v50 = vmul.f32 1.442695, %v937_v2 }
 0x562   : > { %v3189_v62 = vpop.eup %2349  ;;  %2361 = vpow2.f32 %v1075_v23  ;;  %v1005_v54 = vmul.f32 1.442695, %v939_v59  ;;  %v1107_v2 = vmul.f32 1.442695, %v990_v3 }
 0x563   : > { %v1173_v40 = vadd.f32 %v3164_v15, %v1172_v17  ;;  %v3193_v17 = vpop.eup %2351  ;;  %2363 = vpow2.f32 %v1079_v42  ;;  %v1009_v59 = vmul.f32 1.442695, %v941_v21 }
 0x564   : > { %v3198_v44 = vpop.eup %2353  ;;  %2365 = vpow2.f32 %v1083_v47  ;;  %v988_v47 = vsub.f32 %v3006_v52, %v3091_v9 }
 0x565   : > { %v1174_v27 = vadd.f32 %v3173_v30, %v1173_v40  ;;  %v3204_v40 = vpop.eup %2355  ;;  %2367 = vpow2.f32 %v1087_v46  ;;  %v945_v46 = vsub.f32 %v2914_v12, %v3168_v19 }
 0x566   : > { %v3207_v42 = vpop.eup %2357  ;;  %2369 = vpow2.f32 %v1091_v48  ;;  %v1111_v48 = vmul.f32 1.442695, %v992_v38  ;;  %v1103_v12 = vmul.f32 1.442695, %v988_v47  ;;  %v4185_v38 = vld [vmem:[#allocation22_spill] sm:$0xff] }
 0x567   : > { %v1175_v5 = vadd.f32 %v3178_v25, %v1174_v27  ;;  %4177 = vst [vmem:[#allocation17_spill] sm:$0xff] %v3207_v42  ;;  %v1099_v27 = vmul.f32 1.442695, %v986_v34  ;;  %v3211_v56 = vpop.eup %2359  ;;  %2371 = vpow2.f32 %v1001_v50  ;;  %v949_v50 = vsub.f32 %v2924_v1, %v3168_v19 }
 0x568   : > { %4179 = vst [vmem:[#allocation19_spill] sm:$0xff] %v3211_v56  ;;  %v3216_v37 = vpop.eup %2361  ;;  %2373 = vpow2.f32 %v1005_v54 }
 0x569   : > { %v1176_v36 = vadd.f32 %v3184_v29, %v1175_v5  ;;  %v4178_v5 = vld [vmem:[#allocation18_spill] sm:$0xff]  ;;  %4180 = vst [vmem:[#allocation21_spill] sm:$0xff] %v3216_v37  ;;  %v3220_v34 = vpop.eup %2363  ;;  %2375 = vpow2.f32 %v1095_v14  ;;  %v951_v14 = vsub.f32 %v4185_v38, %v3168_v19  ;;  %v1025_v38 = vmul.f32 1.442695, %v949_v50 }
 0x56a   : > { %v943_v32 = vsub.f32 %v4178_v5, %v3168_v19  ;;  %4181 = vst [vmem:[#allocation23_spill] sm:$0xff] %v3220_v34  ;;  %v4182_v5 = vld [vmem:[#allocation20_spill] sm:$0xff]  ;;  %v3225_v3 = vpop.eup %2365  ;;  %2377 = vpow2.f32 %v1099_v27  ;;  %v1017_v27 = vmul.f32 1.442695, %v945_v46  ;;  %v961_v46 = vsub.f32 %v2954_v24, %v3168_v19 }
 0x56b   : > { %v1177_v23 = vadd.f32 %v3189_v62, %v1176_v36  ;;  %v947_v52 = vsub.f32 %v4182_v5, %v3168_v19  ;;  %4183 = vst [vmem:[#allocation25_spill] sm:$0xff] %v3225_v3  ;;  %v3229_v61 = vpop.eup %2367  ;;  %2379 = vpow2.f32 %v1107_v2  ;;  %v955_v24 = vsub.f32 %v2938_v18, %v3168_v19 }
 0x56c   : > { %4184 = vst [vmem:[#allocation14_spill] sm:$0xff] %v3229_v61  ;;  %v3234_v54 = vpop.eup %2369  ;;  %2381 = vpow2.f32 %v1009_v59  ;;  %v1029_v59 = vmul.f32 1.442695, %v951_v14  ;;  %v957_v14 = vsub.f32 %v2944_v20, %v3168_v19 }
 0x56d   : > { %v1178_v49 = vadd.f32 %v3193_v17, %v1177_v23  ;;  %v1013_v23 = vmul.f32 1.442695, %v943_v32  ;;  %v3238_v5 = vpop.eup %2371  ;;  %2383 = vpow2.f32 %v1111_v48  ;;  %v965_v32 = vsub.f32 %v2964_v31, %v3168_v19 }
 0x56e   : > { %v1021_v47 = vmul.f32 1.442695, %v947_v52  ;;  %v3243_v2 = vpop.eup %2373  ;;  %v963_v31 = vsub.f32 %v2958_v28, %v3168_v19 }
 0x56f   : > { %v1179_v36 = vadd.f32 %v3198_v44, %v1178_v49  ;;  %v953_v49 = vsub.f32 %v2934_v16, %v3168_v19  ;;  %2385 = vpow2.f32 %v1013_v23  ;;  %v3247_v11 = vpop.eup %2375  ;;  %v1057_v50 = vmul.f32 1.442695, %v965_v32 }
 0x570   : > { %4186 = vst [vmem:[#allocation16_spill] sm:$0xff] %v3247_v11  ;;  %2387 = vpow2.f32 %v1103_v12  ;;  %v3252_v48 = vpop.eup %2377  ;;  %v1129_v23 = vadd.f32 %v3243_v2, %v3238_v5  ;;  %v1053_v18 = vmul.f32 1.442695, %v963_v31 }
 0x571   : > { %v1180_v21 = vadd.f32 %v3204_v40, %v1179_v36  ;;  %v967_v36 = vsub.f32 %v2968_v33, %v3168_v19  ;;  %2389 = vpow2.f32 %v1017_v27  ;;  %v1033_v52 = vmul.f32 1.442695, %v953_v49 }
 0x572   : > { %2391 = vpow2.f32 %v1021_v47 }
 0x573   : > { %v1181_v1 = vadd.f32 %v3207_v42, %v1180_v21  ;;  %v3256_v21 = vpop.eup %2379  ;;  %2393 = vpow2.f32 %v1025_v38  ;;  %v1061_v28 = vmul.f32 1.442695, %v967_v36 }
 0x574   : > { %v3261_v12 = vpop.eup %2381  ;;  %2395 = vpow2.f32 %v1029_v59 }
 0x575   : > { %v1182_v16 = vadd.f32 %v3211_v56, %v1181_v1  ;;  %v3267_v49 = vpop.eup %2383  ;;  %v1049_v1 = vmul.f32 1.442695, %v961_v46  ;;  %v1130_v32 = vadd.f32 %v3261_v12, %v1129_v23  ;;  %2397 = vpow2.f32 %v1033_v52  ;;  %v4187_v46 = vld [vmem:[#allocation30_spill] sm:$0xff] }
 0x576   : > { %v3271_v47 = vpop.eup %2385  ;;  %2399 = vpow2.f32 %v1057_v50  ;;  %v994_v59 = vsub.f32 %v4187_v46, %v3091_v9  ;;  %v1041_v52 = vmul.f32 1.442695, %v957_v14  ;;  %v998_v14 = vsub.f32 %v3048_v57, %v3091_v9 }
 0x577   : > { %v1183_v33 = vadd.f32 %v3216_v37, %v1182_v16  ;;  %v959_v16 = vsub.f32 %v2948_v22, %v3168_v19  ;;  %v3275_v56 = vpop.eup %2387  ;;  %v1131_v36 = vadd.f32 %v3271_v47, %v1130_v32  ;;  %2401 = vpow2.f32 %v1061_v28  ;;  %v4188_v32 = vld [vmem:[#allocation31_spill] sm:$0xff] }
 0x578   : > { %v3279_v38 = vpop.eup %2389  ;;  %2403 = vpow2.f32 %v1049_v1  ;;  %v996_v42 = vsub.f32 %v4188_v32, %v3091_v9  ;;  %v1000_v1 = vsub.f32 %v3069_v0, %v3091_v9  ;;  %v969_v32 = vsub.f32 %v2972_v35, %v3168_v19 }
 0x579   : > { %v1184_v27 = vadd.f32 %v3220_v34, %v1183_v33  ;;  %v1037_v33 = vmul.f32 1.442695, %v955_v24  ;;  %v3285_v22 = vpop.eup %2391  ;;  %v1132_v50 = vadd.f32 %v3279_v38, %v1131_v36  ;;  %v1045_v34 = vmul.f32 1.442695, %v959_v16 }
 0x57a   : > { %2405 = vpow2.f32 %v1053_v18  ;;  %v997_v0 = vsub.f32 %v3079_v13, %v3168_v19  ;;  %v993_v13 = vsub.f32 %v3040_v4, %v3168_v19  ;;  %v975_v4 = vsub.f32 %v2984_v41, %v3168_v19 }
 0x57b   : > { %v1185_v20 = vadd.f32 %v3225_v3, %v1184_v27  ;;  %v3289_v27 = vpop.eup %2393  ;;  %v1133_v46 = vadd.f32 %v3285_v22, %v1132_v50  ;;  %2407 = vpow2.f32 %v1037_v33  ;;  %v1119_v50 = vmul.f32 1.442695, %v996_v42 }
 0x57c   : > { %v3293_v24 = vpop.eup %2395  ;;  %2409 = vpow2.f32 %v1041_v52  ;;  %v1123_v52 = vmul.f32 1.442695, %v998_v14  ;;  %v999_v42 = vsub.f32 %v3093_v8, %v3168_v19  ;;  %v973_v14 = vsub.f32 %v2980_v39, %v3168_v19 }
 0x57d   : > { %v1186_v31 = vadd.f32 %v3229_v61, %v1185_v20  ;;  %v3297_v23 = vpop.eup %2397  ;;  %v1115_v20 = vmul.f32 1.442695, %v994_v59  ;;  %v1134_v18 = vadd.f32 %v3289_v27, %v1133_v46  ;;  %2411 = vpow2.f32 %v1045_v34  ;;  %v4189_v34 = vld [vmem:[#allocation24_spill] sm:$0xff] }
 0x57e   : > { %v3303_v36 = vpop.eup %2399  ;;  %v971_v46 = vsub.f32 %v4189_v34, %v3168_v19  ;;  %v1065_v8 = vmul.f32 1.442695, %v969_v32  ;;  %v1121_v61 = vmul.f32 1.442695, %v997_v0  ;;  %v991_v0 = vsub.f32 %v3026_v26, %v3168_v19 }
 0x57f   : > { %v1187_v28 = vadd.f32 %v3234_v54, %v1186_v31  ;;  %v3307_v31 = vpop.eup %2401  ;;  %v1135_v9 = vadd.f32 %v3293_v24, %v1134_v18  ;;  %2413 = vpow2.f32 %v1115_v20 }
 0x580   : > { %v2404_v57 = vpop.eup %2403  ;;  %v1217_v59 = vpack.c.bf16 %v3307_v31, %v3303_v36  ;;  %2415 = vpow2.f32 %v1119_v50  ;;  %v989_v50 = vsub.f32 %v4166_v55, %v3168_v19 }
 0x581   : > { %v1188_v16 = vadd.f32 %v3247_v11, %v1187_v28  ;;  %v2406_v33 = vpop.eup %2405  ;;  %v1127_v28 = vmul.f32 1.442695, %v1000_v1  ;;  %v995_v1 = vsub.f32 %v3061_v7, %v3168_v19  ;;  %2417 = vpow2.f32 %v1123_v52 }
 0x582   : > { %1235 = vmatpush.bf16.msrb.mxu1 %v1217_v59  ;;  %v2408_v18 = vpop.eup %2407  ;;  %v1215_v3 = vpack.c.bf16 %v2406_v33, %v2404_v57  ;;  %v1113_v7 = vmul.f32 1.442695, %v993_v13  ;;  %v1069_v52 = vmul.f32 1.442695, %v971_v46  ;;  %v1073_v13 = vmul.f32 1.442695, %v973_v14 }
 0x583   : > { %v1189_v37 = vadd.f32 %v3252_v48, %v1188_v16  ;;  %v1136_v16 = vadd.f32 %v3297_v23, %v1135_v9  ;;  %v2410_v20 = vpop.eup %2409  ;;  %v1125_v9 = vmul.f32 1.442695, %v999_v42  ;;  %2419 = vpow2.f32 %v1127_v28 }
 0x584   : > { %v2412_v11 = vpop.eup %2411  ;;  %2421 = vpow2.f32 %v1065_v8  ;;  %v977_v28 = vsub.f32 %v2988_v43, %v3168_v19  ;;  %v1105_v8 = vmul.f32 1.442695, %v989_v50 }
 0x585   : > { %v1190_v35 = vadd.f32 %v3275_v56, %v1189_v37  ;;  %v1137_v34 = vadd.f32 %v2408_v18, %v1136_v16  ;;  %v3335_v59 = vpop.eup %2413  ;;  %2423 = vpow2.f32 %v1121_v61  ;;  %v1213_v55 = vpack.c.bf16 %v2412_v11, %v2410_v20 }
 0x586   : > { %1236 = vmatpush.bf16.msrb.mxu1 %v1215_v3  ;;  %v3340_v42 = vpop.eup %2415  ;;  %v985_v3 = vsub.f32 %v3004_v51, %v3168_v19  ;;  %2425 = vpow2.f32 %v1125_v9  ;;  %v1077_v61 = vmul.f32 1.442695, %v975_v4  ;;  %v4191_v9 = vld [vmem:[#allocation27_spill] sm:$0xff] }
 0x587   : > { %v1191_v37 = vadd.f32 %v3256_v21, %v1190_v35  ;;  %v1138_v32 = vadd.f32 %v2410_v20, %v1137_v34  ;;  %v1117_v35 = vmul.f32 1.442695, %v995_v1  ;;  %2427 = vpow2.f32 %v1113_v7  ;;  %v3347_v1 = vpop.eup %2417 }
 0x588   : > { %v1109_v20 = vmul.f32 1.442695, %v991_v0 }
 0x589   : > { %v1192_v39 = vadd.f32 %v3267_v49, %v1191_v37  ;;  %v1139_v16 = vadd.f32 %v2412_v11, %v1138_v32  ;;  %v987_v11 = vsub.f32 %v3008_v53, %v3168_v19  ;;  %2429 = vpow2.f32 %v1117_v35  ;;  %v3351_v43 = vpop.eup %2419 }
 0x58a   : > { %1237 = vmatpush.bf16.msrb.mxu1 %v1213_v55  ;;  %2431 = vpow2.f32 %v1069_v52  ;;  %v1211_v37 = vpack.c.bf16 %v2408_v18, %v3297_v23  ;;  %v3355_v34 = vpop.eup %2421  ;;  %v1081_v53 = vmul.f32 1.442695, %v977_v28  ;;  %v1097_v32 = vmul.f32 1.442695, %v985_v3  ;;  %v4192_v18 = vld [vmem:[#allocation28_spill] sm:$0xff] }
 0x58b   : > { %v1193_v41 = vadd.f32 %v3335_v59, %v1192_v39  ;;  %v1140_v46 = vadd.f32 %v2404_v57, %v1139_v16  ;;  %v4190_v57 = vld [vmem:[#allocation26_spill] sm:$0xff]  ;;  %v981_v39 = vsub.f32 %v4191_v9, %v3168_v19  ;;  %2433 = vpow2.f32 %v1073_v13  ;;  %v3361_v4 = vpop.eup %2423 }
 0x58c   : > { %v979_v50 = vsub.f32 %v4190_v57, %v3168_v19  ;;  %2435 = vpow2.f32 %v1105_v8  ;;  %v3367_v23 = vpop.eup %2425  ;;  %v983_v0 = vsub.f32 %v4192_v18, %v3168_v19  ;;  %v1101_v52 = vmul.f32 1.442695, %v987_v11 }
 0x58d   : > { %v1194_v26 = vadd.f32 %v3340_v42, %v1193_v41  ;;  %v1141_v14 = vadd.f32 %v2406_v33, %v1140_v46  ;;  %2437 = vpow2.f32 %v1109_v20  ;;  %v3371_v35 = vpop.eup %2427  ;;  %v1233_v16 = vpack.c.bf16 %v3367_v23, %v3361_v4 }
 0x58e   : > { %1238 = vmatpush.bf16.msrb.mxu1 %v1211_v37  ;;  %2439 = vpow2.f32 %v1077_v61  ;;  %v1209_v55 = vpack.c.bf16 %v3293_v24, %v3289_v27  ;;  %v1085_v28 = vmul.f32 1.442695, %v979_v50  ;;  %v1089_v19 = vmul.f32 1.442695, %v981_v39  ;;  %v477_v39 = vpop.permute.xlu1 %476 }
 0x58f   : > { %v1195_v51 = vadd.f32 %v3347_v1, %v1194_v26  ;;  %v1142_v33 = vadd.f32 %v3303_v36, %v1141_v14  ;;  %v3378_v36 = vpop.eup %2429  ;;  %2441 = vpow2.f32 %v1081_v53  ;;  %1248 = vmatpush.bf16.msrb.mxu2 %v1233_v16  ;;  %v1207_v24 = vpack.c.bf16 %v3285_v22, %v3279_v38  ;;  %v4193_v22 = vld [vmem:[#allocation12_spill] sm:$0xff] }
 0x590   : > { %v3380_v3 = vpop.eup %2431  ;;  %2443 = vpow2.f32 %v1097_v32  ;;  %v1231_v27 = vpack.c.bf16 %v3378_v36, %v3371_v35  ;;  %v1205_v50 = vpack.c.bf16 %v3271_v47, %v3261_v12  ;;  %v532_v32 = vadd.f32 %v4193_v22, %v477_v39 }
 0x591   : > { %v3364_v7 = vadd.f32 %v3351_v43, %v1195_v51  ;;  %v1143_v41 = vadd.f32 %v3307_v31, %v1142_v33  ;;  %v2434_v26 = vpop.eup %2433  ;;  %v1093_v31 = vmul.f32 1.442695, %v983_v0  ;;  %2445 = vpow2.f32 %v1101_v52 }
 0x592   : > { %1239 = vmatpush.bf16.msrb.mxu1 %v1209_v55  ;;  %v2436_v8 = vpop.eup %2435  ;;  %2447 = vpow2.f32 %v1085_v28  ;;  %v1203_v52 = vpack.c.bf16 %v3243_v2, %v3238_v5  ;;  %v1218_v16 = vpack.c.bf16 %v3204_v40, %v3198_v44  ;;  %v603_v12 = vpack.c.bf16 %v532_v32, %v532_v32 }
 0x593   : > { %v1144_v13 = vadd.f32 %v3355_v34, %v1143_v41  ;;  %v2438_v11 = vpop.eup %2437  ;;  %2449 = vpow2.f32 %v1089_v19  ;;  %1249 = vmatpush.bf16.msrb.mxu2 %v1231_v27  ;;  %v1216_v19 = vpack.c.bf16 %v3193_v17, %v3189_v62  ;;  %v1214_v2 = vpack.c.bf16 %v3184_v29, %v3178_v25 }
 0x594   : > { %v2440_v61 = vpop.eup %2439  ;;  %2451 = vpow2.f32 %v1093_v31  ;;  %v1229_v57 = vpack.c.bf16 %v2438_v11, %v2436_v8  ;;  %v1212_v27 = vpack.c.bf16 %v3173_v30, %v3164_v15  ;;  %v1234_v25 = vpack.c.bf16 %v3351_v43, %v3347_v1  ;;  %v4194_v1 = vld [vmem:[#allocation11_spill] sm:$0xff] }
 0x595   : > { %v1145_v46 = vadd.f32 %v3380_v3, %v1144_v13  ;;  %v2442_v51 = vpop.eup %2441  ;;  %v1210_v29 = vpack.c.bf16 %v3157_v45, %v3150_v58  ;;  %v1324_v58 = vpop.trf.xlu0  ;;  %v1206_v45 = vpack.c.bf16 %v3129_v63, %v3124_v6 }
 0x596   : > { %1240 = vmatpush.bf16.msrb.mxu1 %v1207_v24  ;;  %v2444_v14 = vpop.eup %2443  ;;  %v566_v24 = vpop.f32.mrf.mxu2 }
 0x597   : > { %v1146_v20 = vadd.f32 %v2434_v26, %v1145_v46  ;;  %v2446_v9 = vpop.eup %2445  ;;  %1250 = vmatpush.bf16.msrb.mxu2 %v1229_v57  ;;  %v1221_v46 = vpack.c.bf16 %v2440_v61, %v2434_v26  ;;  %v567_v62 = vadd.f32 %v566_v24, %v477_v39  ;;  %v462_v30 = vpop.permute.xlu1 %461  ;;  %v4205_v39 = vld [vmem:[#allocation19_spill] sm:$0xff] }
 0x598   : > { %v2448_v38 = vpop.eup %2447  ;;  %v1227_v0 = vpack.c.bf16 %v2446_v9, %v2444_v14  ;;  %v523_v43 = vadd.f32 %v4194_v1, %v462_v30 }
 0x599   : > { %v1147_v37 = vadd.f32 %v2440_v61, %v1146_v20  ;;  %v2450_v33 = vpop.eup %2449  ;;  %v1223_v5 = vpack.c.bf16 %v2448_v38, %v2442_v51  ;;  %v604_v15 = vpack.c.bf16 %v567_v62, %v567_v62  ;;  %v4201_v61 = vld [vmem:[#allocation10_spill] sm:$0xff] }
 0x59a   : > { %1241 = vmatpush.bf16.msrb.mxu1 %v1205_v50  ;;  %v2452_v41 = vpop.eup %2451 }
 0x59b   : > { %v1148_v53 = vadd.f32 %v2442_v51, %v1147_v37  ;;  %1251 = vmatpush.bf16.msrb.mxu2 %v1227_v0  ;;  %v1225_v28 = vpack.c.bf16 %v2452_v41, %v2450_v33  ;;  %v1219_v51 = vpack.c.bf16 %v3380_v3, %v3355_v34  ;;  %v1208_v34 = vpack.c.bf16 %v3143_v10, %v3136_v60 }
 0x59c   : > { %v4195_v3 = vpack.c.bf16 %v3267_v49, %v3256_v21  ;;  %v4199_v21 = vld [vmem:[#allocation25_spill] sm:$0xff]  ;;  %v4200_v49 = vld [vmem:[#allocation14_spill] sm:$0xff] }
 0x59d   : > { %v1149_v18 = vadd.f32 %v2448_v38, %v1148_v53  ;;  %v3428_v63 = vpop.trf.xlu0 }
 0x59e   : > { %1242 = vmatpush.bf16.msrb.mxu1 %v1203_v52 }
 0x59f   : > { %v1150_v55 = vadd.f32 %v2450_v33, %v1149_v18  ;;  %1252 = vmatpush.bf16.msrb.mxu2 %v1225_v28 }
 0x5a1   : > { %v1151_v47 = vadd.f32 %v2452_v41, %v1150_v55  ;;  %1243 = vmatmul.bf16.vlgmr.msrb.gmra.mxu1 %v603_v12 }
 0x5a2   : > { %1261 = vmatpush.bf16.msra.mxu1 %v1218_v16 }
 0x5a3   : > { %v1152_v13 = vadd.f32 %v2444_v14, %v1151_v47  ;;  %1253 = vmatpush.bf16.msrb.mxu2 %v1223_v5  ;;  %v4203_v14 = vld [vmem:[#allocation23_spill] sm:$0xff] }
 0x5a5   : > { %v1153_v31 = vadd.f32 %v2446_v9, %v1152_v13  ;;  %v1326_v57 = vpop.trf.xlu0  ;;  %v4204_v9 = vld [vmem:[#allocation17_spill] sm:$0xff] }
 0x5a6   : > { %1262 = vmatpush.bf16.msra.mxu1 %v1216_v19  ;;  %v1220_v53 = vpack.c.bf16 %v4205_v39, %v4204_v9 }
 0x5a7   : > { %v1154_v44 = vadd.f32 %v2436_v8, %v1153_v31  ;;  %1254 = vmatpush.bf16.msrb.mxu2 %v1221_v46  ;;  %v4198_v8 = vld [vmem:[#allocation16_spill] sm:$0xff] }
 0x5a8   : > { %v1226_v6 = vpack.c.bf16 %v4198_v8, %v3234_v54 }
 0x5a9   : > { %v1155_v40 = vadd.f32 %v2438_v11, %v1154_v44  ;;  %v1224_v11 = vpack.c.bf16 %v4200_v49, %v4199_v21 }
 0x5aa   : > { %1263 = vmatpush.bf16.msra.mxu1 %v1214_v2  ;;  %v3459_v2 = vpop.f32.mrf.mxu2 }
 0x5ab   : > { %v1156_v20 = vadd.f32 %v3371_v35, %v1155_v40  ;;  %1255 = vmatpush.bf16.msrb.mxu2 %v1219_v51  ;;  %4206 = vst [vmem:[#allocation18_spill] sm:$0xff] %v3459_v2 }
 0x5ad   : > { %v1157_v17 = vadd.f32 %v3378_v36, %v1156_v20  ;;  %v1232_v36 = vpack.c.bf16 %v3340_v42, %v3335_v59  ;;  %v1228_v59 = vpack.c.bf16 %v3275_v56, %v3252_v48  ;;  %v4196_v42 = vld [vmem:[#allocation29_spill] sm:$0xff]  ;;  %v558_v56 = vadd.f32 %v4201_v61, %v462_v30  ;;  %v3439_v38 = vpop.trf.xlu0 }
 0x5ae   : > { %1264 = vmatpush.bf16.msra.mxu1 %v1212_v27  ;;  %1256 = vmatmul.bf16.vlgmr.msrb.gmra.mxu2 %v604_v15  ;;  %v4202_v48 = vld [vmem:[#allocation21_spill] sm:$0xff]  ;;  %v1197_v27 = vrot.slane %v3364_v7, 4 }
 0x5af   : > { %v1158_v26 = vadd.f32 %v3361_v4, %v1157_v17  ;;  %1274 = vmatpush.bf16.msra.mxu2 %v1234_v25  ;;  %v1300_v4 = vpack.c.bf16 %v523_v43, %v523_v43  ;;  %v1222_v37 = vpack.c.bf16 %v4203_v14, %v4202_v48  ;;  %v1301_v50 = vpack.c.bf16 %v558_v56, %v558_v56 }
 0x5b0   : > { %v1198_v17 = vadd.f32 %v1197_v27, %v3364_v7 }
 0x5b1   : > { %v1159_v35 = vadd.f32 %v3367_v23, %v1158_v26  ;;  %v4197_v23 = vld [vmem:[#allocation15_spill] sm:$0xff]  ;;  %v1389_v10 = vsel %vm678_vm8, %v1300_v4, 0  ;;  %v1392_v54 = vsel %vm678_vm8, %v1301_v50, 0 }
 0x5b2   : > { %1265 = vmatpush.bf16.msra.mxu1 %v1210_v29  ;;  %v1204_v60 = vpack.c.bf16 %v4197_v23, %v4196_v42  ;;  %v1199_v26 = vrot.slane %v1198_v17, 2 }
 0x5b3   : > { %1275 = vmatpush.bf16.msra.mxu2 %v1232_v36  ;;  %v1160_v16 = vrot.slane %v1159_v35, 4 }
 0x5b5   : > { %v1328_v22 = vpop.trf.xlu0  ;;  %v1161_v55 = vadd.f32 %v1160_v16, %v1159_v35 }
 0x5b6   : > { %1266 = vmatpush.bf16.msra.mxu1 %v1208_v34 }
 0x5b7   : > { %1276 = vmatpush.bf16.msra.mxu2 %v4195_v3  ;;  %v1162_v28 = vrot.slane %v1161_v55, 2 }
 0x5b9   : > { %v1163_v19 = vadd.f32 %v1162_v28, %v1161_v55 }
 0x5ba   : > { %1267 = vmatpush.bf16.msra.mxu1 %v1206_v45 }
 0x5bb   : > { %1277 = vmatpush.bf16.msra.mxu2 %v1228_v59  ;;  %v1164_v5 = vrot.slane %v1163_v19, 1 }
 0x5bd   : > { %v3443_v32 = vpop.trf.xlu0  ;;  %v1165_v44 = vadd.f32 %v1164_v5, %v1163_v19 }
 0x5be   : > { %1268 = vmatpush.bf16.msra.mxu1 %v1204_v60 }
 0x5bf   : > { %1278 = vmatpush.bf16.msra.mxu2 %v1226_v6  ;;  %2453 = vrcp.f32 %v1165_v44 }
 0x5c1   : > { %1269 = vmatmul.bf16.vlgmr.msra.gmra.mxu1 %v603_v12 }
 0x5c2   : > { %1401 = vmatpush.bf16.msrb.mxu1 %v1389_v10 }
 0x5c3   : > { %1279 = vmatpush.bf16.msra.mxu2 %v1224_v11 }
 0x5c5   : > { %v1330_v33 = vpop.trf.xlu0  ;;  %v2454_v20 = vpop.eup %2453 }
 0x5c7   : > { %1280 = vmatpush.bf16.msra.mxu2 %v1222_v37 }
 0x5cb   : > { %1281 = vmatpush.bf16.msra.mxu2 %v1220_v53 }
 0x5cd   : > { %v3447_v18 = vpop.trf.xlu0 }
 0x5ce   : > { %1282 = vmatmul.bf16.vlgmr.msra.gmra.mxu2 %v604_v15  ;;  %v1200_v15 = vadd.f32 %v1199_v26, %v1198_v17 }
 0x5cf   : > { %1490 = vmatpush.bf16.msrb.mxu2 %v1392_v54 }
 0x5d0   : > { %v1201_v35 = vrot.slane %v1200_v15, 1 }
 0x5d1   : > { %2227 = vmatmul.msk.bf16.vlgmr.msrb.gmra.mxu1 %vm629_vm9, %v1324_v58 }
 0x5d2   : > { %v1202_v36 = vadd.f32 %v1201_v35, %v1200_v15 }
 0x5d4   : > { %2455 = vrcp.f32 %v1202_v36 }
 0x5d5   : > { %v1332_v0 = vpop.trf.xlu0 }
 0x5da   : > { %v2456_v43 = vpop.eup %2455 }
 0x5dd   : > { %v3451_v52 = vpop.trf.xlu0 }
 0x5de   : > { %2243 = vmatmul.msk.bf16.vlgmr.msrb.gmra.mxu2 %vm629_vm9, %v1324_v58 }
 0x5e1   : > { %2228 = vmatmul.msk.bf16.gmra.mxu1 %vm629_vm9, %v1326_v57 }
 0x5e5   : > { %v1334_v41 = vpop.trf.xlu0 }
 0x5ed   : > { %v3455_v12 = vpop.trf.xlu0 }
 0x5ee   : > { %2244 = vmatmul.msk.bf16.gmra.mxu2 %vm629_vm9, %v1326_v57 }
 0x5f1   : > { %2229 = vmatmul.msk.bf16.gmra.mxu1 %vm629_vm9, %v1328_v22 }
 0x5f5   : > { %v1336_v31 = vpop.trf.xlu0 }
 0x5fd   : > { %v3463_v40 = vpop.trf.xlu0 }
 0x5fe   : > { %2245 = vmatmul.msk.bf16.gmra.mxu2 %vm629_vm9, %v1328_v22 }
 0x601   : > { %2230 = vmatmul.msk.bf16.gmra.mxu1 %vm629_vm9, %v1330_v33 }
 0x605   : > { %v1338_v25 = vpop.trf.xlu0 }
 0x60e   : > { %2246 = vmatmul.msk.bf16.gmra.mxu2 %vm629_vm9, %v1330_v33 }
 0x611   : > { %2231 = vmatmul.msk.bf16.gmra.mxu1 %vm629_vm9, %v1332_v0 }
 0x61e   : > { %2247 = vmatmul.msk.bf16.gmra.mxu2 %vm629_vm9, %v1332_v0  ;;  %v1244_v47 = vpop.f32.mrf.mxu1 }
 0x621   : > { %2232 = vmatmul.msk.bf16.gmra.mxu1 %vm629_vm9, %v1334_v41 }
 0x626   : > { %v1246_v13 = vpop.f32.mrf.mxu1 }
 0x62e   : > { %2248 = vmatmul.msk.bf16.gmra.mxu2 %vm629_vm9, %v1334_v41 }
 0x631   : > { %2233 = vmatmul.msk.bf16.gmra.mxu1 %vm629_vm9, %v1336_v31  ;;  %v1257_v46 = vpop.f32.mrf.mxu2 }
 0x632   : > { %v1258_v24 = vadd.f32 %v1257_v46, %v1244_v47 }
 0x634   : > { %v3466_v62 = vmul.f32 %v2454_v20, %v1258_v24 }
 0x636   : > { %4207 = vst [vmem:[#allocation20_spill] sm:$0xff] %v3466_v62 }
 0x639   : > { %v1259_v29 = vpop.f32.mrf.mxu2 }
 0x63e   : > { %v1270_v51 = vpop.f32.mrf.mxu1  ;;  %2249 = vmatmul.msk.bf16.gmra.mxu2 %vm629_vm9, %v1336_v31 }
 0x641   : > { %2234 = vmatmul.msk.bf16.gmra.mxu1 %vm629_vm9, %v1338_v25 }
 0x646   : > { %v1272_v30 = vpop.f32.mrf.mxu1 }
 0x64e   : > { %v3471_v34 = vpop.f32.mrf.mxu1  ;;  %2250 = vmatmul.msk.bf16.gmra.mxu2 %vm629_vm9, %v1338_v25 }
 0x651   : > { %2235 = vmatmul.msk.bf16.gmra.mxu1 %vm629_vm9, %v3428_v63  ;;  %v1283_v7 = vpop.f32.mrf.mxu2 }
 0x652   : > { %v1284_v1 = vadd.f32 %v1283_v7, %v1270_v51 }
 0x654   : > { %v3478_v45 = vmul.f32 %v2456_v43, %v1284_v1 }
 0x656   : > { %v3476_v58 = vpop.f32.mrf.mxu1  ;;  %4208 = vst [vmem:[#allocation22_spill] sm:$0xff] %v3478_v45 }
 0x659   : > { %v1285_v4 = vpop.f32.mrf.mxu2 }
 0x65e   : > { %v3480_v3 = vpop.f32.mrf.mxu1  ;;  %2251 = vmatmul.msk.bf16.gmra.mxu2 %vm629_vm9, %v3428_v63 }
 0x65f   : > { %v1572_v30 = vmax.f32 %v3471_v34, %v3480_v3 }
 0x661   : > { %2236 = vmatmul.msk.bf16.gmra.mxu1 %vm629_vm9, %v3439_v38  ;;  %v3486_v59 = vpop.f32.mrf.mxu2 }
 0x666   : > { %v3488_v42 = vpop.f32.mrf.mxu1 }
 0x667   : > { %v1573_v35 = vmax.f32 %v3476_v58, %v3488_v42 }
 0x669   : > { %v3490_v23 = vpop.f32.mrf.mxu2 }
 0x66e   : > { %v3492_v60 = vpop.f32.mrf.mxu1  ;;  %2252 = vmatmul.msk.bf16.gmra.mxu2 %vm629_vm9, %v3439_v38 }
 0x66f   : > { %v1574_v7 = vmax.f32 %v1572_v30, %v3492_v60 }
 0x671   : > { %2237 = vmatmul.msk.bf16.gmra.mxu1 %vm629_vm9, %v3443_v32  ;;  %v3498_v10 = vpop.f32.mrf.mxu2 }
 0x676   : > { %v3500_v8 = vpop.f32.mrf.mxu1 }
 0x677   : > { %4209 = vst [vmem:[#allocation30_spill] sm:$0xff] %v3500_v8  ;;  %v1575_v1 = vmax.f32 %v1573_v35, %v3500_v8 }
 0x679   : > { %v3502_v6 = vpop.f32.mrf.mxu2 }
 0x67a   : > { %4210 = vst [vmem:[#allocation31_spill] sm:$0xff] %v3502_v6 }
 0x67e   : > { %v3504_v63 = vpop.f32.mrf.mxu1  ;;  %2253 = vmatmul.msk.bf16.gmra.mxu2 %vm629_vm9, %v3443_v32  ;;  %v1339_v32 = vpop.trf.xlu0 }
 0x67f   : > { %v1576_v4 = vmax.f32 %v1574_v7, %v3504_v63 }
 0x681   : > { %2238 = vmatmul.msk.bf16.gmra.mxu1 %vm629_vm9, %v3447_v18  ;;  %v3510_v21 = vpop.f32.mrf.mxu2 }
 0x686   : > { %v3512_v49 = vpop.f32.mrf.mxu1 }
 0x689   : > { %v3514_v11 = vpop.f32.mrf.mxu2 }
 0x68e   : > { %v3516_v61 = vpop.f32.mrf.mxu1  ;;  %2254 = vmatmul.msk.bf16.gmra.mxu2 %vm629_vm9, %v3447_v18 }
 0x68f   : > { %v1578_v45 = vmax.f32 %v1576_v4, %v3516_v61 }
 0x691   : > { %2239 = vmatmul.msk.bf16.gmra.mxu1 %vm629_vm9, %v3451_v52  ;;  %v3522_v56 = vpop.f32.mrf.mxu2 }
 0x696   : > { %v3524_v48 = vpop.f32.mrf.mxu1 }
 0x699   : > { %v3526_v14 = vpop.f32.mrf.mxu2 }
 0x69e   : > { %v3528_v37 = vpop.f32.mrf.mxu1  ;;  %2255 = vmatmul.msk.bf16.gmra.mxu2 %vm629_vm9, %v3451_v52 }
 0x69f   : > { %v1580_v2 = vmax.f32 %v1578_v45, %v3528_v37 }
 0x6a1   : > { %2240 = vmatmul.msk.bf16.gmra.mxu1 %vm629_vm9, %v3455_v12  ;;  %v3534_v57 = vpop.f32.mrf.mxu2 }
 0x6a6   : > { %v3536_v50 = vpop.f32.mrf.mxu1 }
 0x6a7   : > { %4211 = vst [vmem:[#allocation24_spill] sm:$0xff] %v3536_v50 }
 0x6a9   : > { %v3538_v9 = vpop.f32.mrf.mxu2 }
 0x6ae   : > { %v3540_v39 = vpop.f32.mrf.mxu1  ;;  %2256 = vmatmul.msk.bf16.gmra.mxu2 %vm629_vm9, %v3455_v12 }
 0x6af   : > { %v1582_v30 = vmax.f32 %v1580_v2, %v3540_v39 }
 0x6b1   : > { %2241 = vmatmul.msk.bf16.gmra.mxu1 %vm629_vm9, %v3463_v40  ;;  %v3546_v53 = vpop.f32.mrf.mxu2 }
 0x6b6   : > { %v3548_v54 = vpop.f32.mrf.mxu1 }
 0x6b7   : > { %4212 = vst [vmem:[#allocation26_spill] sm:$0xff] %v3548_v54 }
 0x6b9   : > { %v3550_v38 = vpop.f32.mrf.mxu2 }
 0x6be   : > { %v3552_v22 = vpop.f32.mrf.mxu1  ;;  %2257 = vmatmul.msk.bf16.gmra.mxu2 %vm629_vm9, %v3463_v40 }
 0x6bf   : > { %v1584_v7 = vmax.f32 %v1582_v30, %v3552_v22 }
 0x6c1   : > { %2242 = vmatmul.msk.bf16.gmra.mxu1 %vm629_vm9, %v1339_v32  ;;  %v3557_v33 = vpop.f32.mrf.mxu2 }
 0x6c6   : > { %v3559_v18 = vpop.f32.mrf.mxu1 }
 0x6c9   : > { %v3561_v0 = vpop.f32.mrf.mxu2 }
 0x6ce   : > { %v3563_v52 = vpop.f32.mrf.mxu1  ;;  %2258 = vmatmul.msk.bf16.gmra.mxu2 %vm629_vm9, %v1339_v32  ;;  %v1577_v32 = vmax.f32 %v1575_v1, %v3512_v49 }
 0x6cf   : > { %v1586_v4 = vmax.f32 %v1584_v7, %v3563_v52 }
 0x6d0   : > { %v1579_v62 = vmax.f32 %v1577_v32, %v3524_v48 }
 0x6d1   : > { %v3566_v41 = vpop.f32.mrf.mxu2 }
 0x6d6   : > { %v3568_v16 = vpop.f32.mrf.mxu1 }
 0x6d9   : > { %v3570_v55 = vpop.f32.mrf.mxu2 }
 0x6de   : > { %v3572_v12 = vpop.f32.mrf.mxu1 }
 0x6df   : > { %4213 = vst [vmem:[#allocation27_spill] sm:$0xff] %v3572_v12  ;;  %v1588_v45 = vmax.f32 %v1586_v4, %v3572_v12 }
 0x6e1   : > { %v3574_v47 = vpop.f32.mrf.mxu2 }
 0x6e6   : > { %v3576_v28 = vpop.f32.mrf.mxu1 }
 0x6e7   : > { %4214 = vst [vmem:[#allocation28_spill] sm:$0xff] %v3576_v28 }
 0x6e9   : > { %v3578_v19 = vpop.f32.mrf.mxu2 }
 0x6ee   : > { %v3580_v13 = vpop.f32.mrf.mxu1 }
 0x6ef   : > { %v1590_v2 = vmax.f32 %v1588_v45, %v3580_v13 }
 0x6f1   : > { %v3582_v31 = vpop.f32.mrf.mxu2 }
 0x6f6   : > { %v3584_v5 = vpop.f32.mrf.mxu1 }
 0x6f9   : > { %v3586_v44 = vpop.f32.mrf.mxu2 }
 0x6fa   : > { %4215 = vst [vmem:[#allocation12_spill] sm:$0xff] %v3586_v44 }
 0x6fe   : > { %v3588_v40 = vpop.f32.mrf.mxu1 }
 0x6ff   : > { %v1592_v30 = vmax.f32 %v1590_v2, %v3588_v40 }
 0x701   : > { %v3590_v46 = vpop.f32.mrf.mxu2 }
 0x706   : > { %v3592_v27 = vpop.f32.mrf.mxu1 }
 0x707   : > { %4216 = vst [vmem:[#allocation11_spill] sm:$0xff] %v3592_v27 }
 0x709   : > { %v3594_v24 = vpop.f32.mrf.mxu2 }
 0x70a   : > { %4217 = vst [vmem:[#allocation29_spill] sm:$0xff] %v3594_v24 }
 0x70e   : > { %v3596_v20 = vpop.f32.mrf.mxu1 }
 0x70f   : > { %v1594_v7 = vmax.f32 %v1592_v30, %v3596_v20  ;;  %v1610_v30 = vmax.f32 %v3490_v23, %v3502_v6 }
 0x711   : > { %v3598_v17 = vpop.f32.mrf.mxu2 }
 0x712   : > { %4218 = vst [vmem:[#allocation15_spill] sm:$0xff] %v3598_v17 }
 0x716   : > { %v3600_v51 = vpop.f32.mrf.mxu1 }
 0x717   : > { %4219 = vst [vmem:[#allocation16_spill] sm:$0xff] %v3600_v51 }
 0x719   : > { %v3602_v25 = vpop.f32.mrf.mxu2 }
 0x71a   : > { %4220 = vst [vmem:[#allocation25_spill] sm:$0xff] %v3602_v25 }
 0x71e   : > { %v3604_v29 = vpop.f32.mrf.mxu1 }
 0x71f   : > { %4221 = vst [vmem:[#allocation14_spill] sm:$0xff] %v3604_v29  ;;  %v1596_v4 = vmax.f32 %v1594_v7, %v3604_v29 }
 0x721   : > { %v3606_v26 = vpop.f32.mrf.mxu2 }
 0x722   : > { %4222 = vst [vmem:[#allocation10_spill] sm:$0xff] %v3606_v26  ;;  %v1581_v26 = vmax.f32 %v1579_v62, %v3536_v50 }
 0x724   : > { %v1583_v35 = vmax.f32 %v1581_v26, %v3548_v54 }
 0x726   : > { %v3608_v15 = vpop.f32.mrf.mxu1  ;;  %v1585_v1 = vmax.f32 %v1583_v35, %v3559_v18 }
 0x727   : > { %4223 = vst [vmem:[#allocation21_spill] sm:$0xff] %v3608_v15 }
 0x728   : > { %v1587_v32 = vmax.f32 %v1585_v1, %v3568_v16 }
 0x729   : > { %v3614_v36 = vpop.f32.mrf.mxu2 }
 0x72a   : > { %4224 = vst [vmem:[#allocation23_spill] sm:$0xff] %v3614_v36  ;;  %v1589_v62 = vmax.f32 %v1587_v32, %v3576_v28 }
 0x72c   : > { %v1591_v26 = vmax.f32 %v1589_v62, %v3584_v5 }
 0x72e   : > { %v3618_v43 = vpop.f32.mrf.mxu1  ;;  %v1593_v35 = vmax.f32 %v1591_v26, %v3592_v27 }
 0x72f   : > { %v1598_v28 = vmax.f32 %v1596_v4, %v3618_v43 }
 0x730   : > { %v1595_v1 = vmax.f32 %v1593_v35, %v3600_v51  ;;  %v1609_v35 = vmax.f32 %v3486_v59, %v3498_v10 }
 0x731   : > { %v3626_v17 = vpop.f32.mrf.mxu2 }
 0x732   : > { %v1597_v32 = vmax.f32 %v1595_v1, %v3608_v15  ;;  %v1612_v1 = vmax.f32 %v1610_v30, %v3514_v11  ;;  %v1611_v4 = vmax.f32 %v1609_v35, %v3510_v21 }
 0x734   : > { %v1613_v15 = vmax.f32 %v1611_v4, %v3522_v56 }
 0x736   : > { %v3630_v8 = vpop.f32.mrf.mxu1 }
 0x737   : > { %4225 = vst [vmem:[#allocation17_spill] sm:$0xff] %v3630_v8  ;;  %v1599_v45 = vmax.f32 %v1597_v32, %v3630_v8  ;;  %v1614_v32 = vmax.f32 %v1612_v1, %v3526_v14 }
 0x739   : > { %v3638_v50 = vpop.f32.mrf.mxu2 }
 0x73e   : > { %v3642_v54 = vpop.f32.mrf.mxu1 }
 0x73f   : > { %v1600_v2 = vmax.f32 %v1598_v28, %v3642_v54 }
 0x741   : > { %v3651_v12 = vpop.f32.mrf.mxu2 }
 0x746   : > { %v3654_v62 = vpop.f32.mrf.mxu1 }
 0x747   : > { %v1601_v26 = vmax.f32 %v1599_v45, %v3654_v62 }
 0x749   : > { %v1602_v27 = vmax.f32 %v1600_v2, %v1601_v26  ;;  %v3666_v28 = vpop.f32.mrf.mxu2  ;;  %v1616_v2 = vmax.f32 %v1614_v32, %v3538_v9  ;;  %v1615_v26 = vmax.f32 %v1613_v15, %v3534_v57 }
 0x74b   : > { %v1603_v7 = vrot.slane %v1602_v27, 4  ;;  %v1618_v6 = vmax.f32 %v1616_v2, %v3550_v38  ;;  %v1617_v8 = vmax.f32 %v1615_v26, %v3546_v53 }
 0x74d   : > { %v1604_v51 = vmax.f32 %v1602_v27, %v1603_v7  ;;  %v1620_v35 = vmax.f32 %v1618_v6, %v3561_v0  ;;  %v1619_v27 = vmax.f32 %v1617_v8, %v3557_v33 }
 0x74f   : > { %v1605_v45 = vrot.slane %v1604_v51, 2  ;;  %v1622_v7 = vmax.f32 %v1620_v35, %v3570_v55  ;;  %v1621_v1 = vmax.f32 %v1619_v27, %v3566_v41 }
 0x751   : > { %v1606_v29 = vmax.f32 %v1604_v51, %v1605_v45  ;;  %v1624_v32 = vmax.f32 %v1622_v7, %v3578_v19  ;;  %v1623_v15 = vmax.f32 %v1621_v1, %v3574_v47  ;;  %v3680_v51 = vpop.f32.mrf.mxu2  ;;  %v4226_v7 = vld [vmem:[#allocation15_spill] sm:$0xff] }
 0x753   : > { %v1607_v30 = vrot.slane %v1606_v29, 1  ;;  %v1626_v45 = vmax.f32 %v1624_v32, %v3586_v44  ;;  %v1625_v2 = vmax.f32 %v1623_v15, %v3582_v31 }
 0x755   : > { %v3676_v4 = vmax.f32 %v1606_v29, %v1607_v30  ;;  %v1628_v26 = vmax.f32 %v1626_v45, %v3594_v24  ;;  %v1627_v30 = vmax.f32 %v1625_v2, %v3590_v46  ;;  %v4227_v24 = vld [vmem:[#allocation10_spill] sm:$0xff] }
 0x756   : > { %v4228_v2 = vld [vmem:[#allocation30_spill] sm:$0xff] }
 0x757   : > { %v1646_v6 = vsub.f32 %v3471_v34, %v3676_v4  ;;  %v1648_v8 = vsub.f32 %v3476_v58, %v3676_v4  ;;  %v1650_v29 = vsub.f32 %v3480_v3, %v3676_v4  ;;  %v1630_v35 = vmax.f32 %v1628_v26, %v3602_v25 }
 0x758   : > { %v1652_v27 = vsub.f32 %v3488_v42, %v3676_v4  ;;  %v1629_v1 = vmax.f32 %v1627_v30, %v4226_v7  ;;  %v1654_v58 = vsub.f32 %v3492_v60, %v3676_v4  ;;  %v1656_v26 = vsub.f32 %v4228_v2, %v3676_v4 }
 0x759   : > { %v1710_v32 = vmul.f32 1.442695, %v1646_v6  ;;  %v1714_v15 = vmul.f32 1.442695, %v1648_v8  ;;  %v1632_v34 = vmax.f32 %v1630_v35, %v3614_v36  ;;  %v1718_v45 = vmul.f32 1.442695, %v1650_v29  ;;  %v3704_v6 = vpop.f32.mrf.mxu2 }
 0x75a   : > { %v1631_v44 = vmax.f32 %v1629_v1, %v4227_v24  ;;  %v1722_v42 = vmul.f32 1.442695, %v1652_v27  ;;  %v1658_v60 = vsub.f32 %v3504_v63, %v3676_v4  ;;  %v1726_v29 = vmul.f32 1.442695, %v1654_v58 }
 0x75b   : > { %2457 = vpow2.f32 %v1710_v32  ;;  %v1634_v3 = vmax.f32 %v1632_v34, %v3638_v50  ;;  %v1660_v1 = vsub.f32 %v3512_v49, %v3676_v4  ;;  %v1730_v32 = vmul.f32 1.442695, %v1656_v26 }
 0x75c   : > { %2459 = vpow2.f32 %v1714_v15  ;;  %v1633_v30 = vmax.f32 %v1631_v44, %v3626_v17  ;;  %v1662_v63 = vsub.f32 %v3516_v61, %v3676_v4  ;;  %v1734_v58 = vmul.f32 1.442695, %v1658_v60 }
 0x75d   : > { %v1636_v8 = vmax.f32 %v1634_v3, %v3666_v28  ;;  %2461 = vpow2.f32 %v1718_v45  ;;  %v1664_v49 = vsub.f32 %v3524_v48, %v3676_v4  ;;  %v1738_v2 = vmul.f32 1.442695, %v1660_v1 }
 0x75e   : > { %v1635_v35 = vmax.f32 %v1633_v30, %v3651_v12  ;;  %2463 = vpow2.f32 %v1722_v42  ;;  %v1666_v61 = vsub.f32 %v3528_v37, %v3676_v4  ;;  %v1670_v37 = vsub.f32 %v3540_v39, %v3676_v4 }
 0x75f   : > { %v1638_v27 = vmax.f32 %v1636_v8, %v3704_v6  ;;  %2465 = vpow2.f32 %v1726_v29  ;;  %v1742_v8 = vmul.f32 1.442695, %v1662_v63  ;;  %v1746_v1 = vmul.f32 1.442695, %v1664_v49 }
 0x760   : > { %v1637_v34 = vmax.f32 %v1635_v35, %v3680_v51  ;;  %2467 = vpow2.f32 %v1730_v32  ;;  %v1750_v63 = vmul.f32 1.442695, %v1666_v61  ;;  %v1676_v39 = vsub.f32 %v3559_v18, %v3676_v4 }
 0x761   : > { %v3713_v15 = vpop.eup %2457  ;;  %2469 = vpow2.f32 %v1734_v58  ;;  %v1758_v61 = vmul.f32 1.442695, %v1670_v37  ;;  %v1686_v25 = vsub.f32 %v3580_v13, %v3676_v4 }
 0x762   : > { %4229 = vst [vmem:[#allocation19_spill] sm:$0xff] %v3713_v15  ;;  %v3715_v44 = vpop.eup %2459  ;;  %v1639_v26 = vmax.f32 %v1637_v34, %v1638_v27  ;;  %2471 = vpow2.f32 %v1738_v2  ;;  %v1674_v2 = vsub.f32 %v3552_v22, %v3676_v4  ;;  %v1680_v22 = vsub.f32 %v3568_v16, %v3676_v4 }
 0x763   : > { %4230 = vst [vmem:[#allocation10_spill] sm:$0xff] %v3715_v44  ;;  %v1838_v45 = vadd.f32 %v3715_v44, %v3713_v15  ;;  %v3722_v3 = vpop.eup %2461  ;;  %v4231_v44 = vld [vmem:[#allocation24_spill] sm:$0xff]  ;;  %2473 = vpow2.f32 %v1742_v8  ;;  %v4232_v15 = vld [vmem:[#allocation26_spill] sm:$0xff]  ;;  %v1678_v8 = vsub.f32 %v3563_v52, %v3676_v4 }
 0x764   : > { %v3727_v30 = vpop.eup %2463  ;;  %v1640_v60 = vrot.slane %v1639_v26, 4  ;;  %v1668_v48 = vsub.f32 %v4231_v44, %v3676_v4  ;;  %v1672_v44 = vsub.f32 %v4232_v15, %v3676_v4  ;;  %2475 = vpow2.f32 %v1746_v1  ;;  %v4234_v52 = vld [vmem:[#allocation28_spill] sm:$0xff] }
 0x765   : > { %v1839_v42 = vadd.f32 %v3722_v3, %v1838_v45  ;;  %v3732_v35 = vpop.eup %2465  ;;  %2477 = vpow2.f32 %v1750_v63  ;;  %v1774_v16 = vmul.f32 1.442695, %v1678_v8  ;;  %v4235_v8 = vld [vmem:[#allocation11_spill] sm:$0xff] }
 0x766   : > { %v1641_v32 = vmax.f32 %v1639_v26, %v1640_v60  ;;  %v3737_v34 = vpop.eup %2467  ;;  %v1754_v49 = vmul.f32 1.442695, %v1668_v48  ;;  %v1762_v48 = vmul.f32 1.442695, %v1672_v44 }
 0x767   : > { %v1840_v29 = vadd.f32 %v3727_v30, %v1839_v42  ;;  %v3742_v42 = vpop.eup %2469 }
 0x768   : > { %v1642_v58 = vrot.slane %v1641_v32, 2  ;;  %2479 = vpow2.f32 %v1754_v49 }
 0x769   : > { %v1841_v27 = vadd.f32 %v3732_v35, %v1840_v29  ;;  %v3749_v29 = vpop.eup %2471  ;;  %2481 = vpow2.f32 %v1758_v61 }
 0x76a   : > { %v1643_v60 = vmax.f32 %v1641_v32, %v1642_v58  ;;  %v3756_v1 = vpop.eup %2473  ;;  %v4233_v32 = vld [vmem:[#allocation27_spill] sm:$0xff]  ;;  %v1766_v58 = vmul.f32 1.442695, %v1674_v2  ;;  %v1688_v2 = vsub.f32 %v3584_v5, %v3676_v4  ;;  %2483 = vpow2.f32 %v1762_v48 }
 0x76b   : > { %v1842_v45 = vadd.f32 %v3737_v34, %v1841_v27  ;;  %v1682_v27 = vsub.f32 %v4233_v32, %v3676_v4  ;;  %v3763_v37 = vpop.eup %2475  ;;  %v1778_v32 = vmul.f32 1.442695, %v1680_v22  ;;  %v1706_v5 = vsub.f32 %v3642_v54, %v3676_v4 }
 0x76c   : > { %v1644_v63 = vrot.slane %v1643_v60, 1  ;;  %v3770_v49 = vpop.eup %2477  ;;  %2485 = vpow2.f32 %v1766_v58  ;;  %v1708_v54 = vsub.f32 %v3654_v62, %v3676_v4 }
 0x76d   : > { %v1843_v26 = vadd.f32 %v3742_v42, %v1842_v45  ;;  %v1684_v45 = vsub.f32 %v4234_v52, %v3676_v4  ;;  %v1782_v52 = vmul.f32 1.442695, %v1682_v27  ;;  %v1794_v27 = vmul.f32 1.442695, %v1688_v2 }
 0x76e   : > { %v3777_v61 = vmax.f32 %v1643_v60, %v1644_v63  ;;  %v3779_v13 = vpop.eup %2479  ;;  %v1830_v2 = vmul.f32 1.442695, %v1706_v5 }
 0x76f   : > { %v1844_v15 = vadd.f32 %v3749_v29, %v1843_v26  ;;  %v1770_v26 = vmul.f32 1.442695, %v1676_v39  ;;  %v1786_v7 = vmul.f32 1.442695, %v1684_v45  ;;  %v3786_v48 = vpop.eup %2481 }
 0x770   : > { %v1647_v63 = vsub.f32 %v3486_v59, %v3777_v61  ;;  %v1649_v45 = vsub.f32 %v3490_v23, %v3777_v61 }
 0x771   : > { %v1845_v18 = vadd.f32 %v3756_v1, %v1844_v15  ;;  %v1690_v15 = vsub.f32 %v3588_v40, %v3676_v4  ;;  %2487 = vpow2.f32 %v1770_v26  ;;  %v1790_v40 = vmul.f32 1.442695, %v1686_v25  ;;  %v3791_v26 = vpop.eup %2483 }
 0x772   : > { %2489 = vpow2.f32 %v1774_v16  ;;  %v3797_v16 = vpop.eup %2485  ;;  %v1716_v5 = vmul.f32 1.442695, %v1649_v45 }
 0x773   : > { %v1846_v44 = vadd.f32 %v3763_v37, %v1845_v18  ;;  %v1692_v18 = vsub.f32 %v4235_v8, %v3676_v4  ;;  %2491 = vpow2.f32 %v1778_v32  ;;  %v1798_v60 = vmul.f32 1.442695, %v1690_v15 }
 0x774   : > { %2493 = vpow2.f32 %v1782_v52  ;;  %v1702_v32 = vsub.f32 %v3618_v43, %v3676_v4  ;;  %v1712_v52 = vmul.f32 1.442695, %v1647_v63 }
 0x775   : > { %v1847_v39 = vadd.f32 %v3770_v49, %v1846_v44  ;;  %2495 = vpow2.f32 %v1786_v7  ;;  %v1802_v25 = vmul.f32 1.442695, %v1692_v18  ;;  %v1694_v44 = vsub.f32 %v3596_v20, %v3676_v4 }
 0x776   : > { %2497 = vpow2.f32 %v1790_v40  ;;  %v1651_v7 = vsub.f32 %v3498_v10, %v3777_v61  ;;  %v1834_v18 = vmul.f32 1.442695, %v1708_v54  ;;  %v4239_v10 = vld [vmem:[#allocation14_spill] sm:$0xff] }
 0x777   : > { %v1848_v22 = vadd.f32 %v3779_v13, %v1847_v39  ;;  %v3802_v59 = vpop.eup %2487  ;;  %2499 = vpow2.f32 %v1794_v27  ;;  %v4237_v39 = vld [vmem:[#allocation17_spill] sm:$0xff]  ;;  %v1806_v43 = vmul.f32 1.442695, %v1694_v44  ;;  %v4238_v27 = vld [vmem:[#allocation31_spill] sm:$0xff]  ;;  %v1698_v63 = vsub.f32 %v4239_v10, %v3676_v4 }
 0x778   : > { %v3806_v62 = vpop.eup %2489  ;;  %2501 = vpow2.f32 %v1798_v60  ;;  %v1704_v8 = vsub.f32 %v4237_v39, %v3676_v4  ;;  %v1653_v60 = vsub.f32 %v4238_v27, %v3777_v61  ;;  %v1720_v45 = vmul.f32 1.442695, %v1651_v7 }
 0x779   : > { %v1849_v58 = vadd.f32 %v3786_v48, %v1848_v22  ;;  %4236 = vst [vmem:[#allocation30_spill] sm:$0xff] %v3806_v62  ;;  %v3811_v20 = vpop.eup %2491  ;;  %2503 = vpow2.f32 %v1802_v25  ;;  %v1655_v25 = vsub.f32 %v3510_v21, %v3777_v61  ;;  %v4241_v21 = vld [vmem:[#allocation16_spill] sm:$0xff] }
 0x77a   : > { %v3815_v40 = vpop.eup %2493  ;;  %2505 = vpow2.f32 %v1830_v2  ;;  %v4240_v2 = vld [vmem:[#allocation21_spill] sm:$0xff]  ;;  %v1826_v27 = vmul.f32 1.442695, %v1704_v8  ;;  %v1696_v7 = vsub.f32 %v4241_v21, %v3676_v4 }
 0x77b   : > { %v1850_v15 = vadd.f32 %v3791_v26, %v1849_v58  ;;  %v3820_v58 = vpop.eup %2495  ;;  %2507 = vpow2.f32 %v1712_v52  ;;  %v1657_v52 = vsub.f32 %v3514_v11, %v3777_v61 }
 0x77c   : > { %v3824_v39 = vpop.eup %2497  ;;  %2509 = vpow2.f32 %v1716_v5  ;;  %v1814_v5 = vmul.f32 1.442695, %v1698_v63 }
 0x77d   : > { %v1851_v23 = vadd.f32 %v3797_v16, %v1850_v15  ;;  %v1822_v15 = vmul.f32 1.442695, %v1702_v32  ;;  %v3829_v44 = vpop.eup %2499  ;;  %2511 = vpow2.f32 %v1834_v18  ;;  %v1659_v18 = vsub.f32 %v3522_v56, %v3777_v61 }
 0x77e   : > { %v3833_v36 = vpop.eup %2501  ;;  %2513 = vpow2.f32 %v1806_v43  ;;  %v1728_v43 = vmul.f32 1.442695, %v1655_v25  ;;  %v1732_v63 = vmul.f32 1.442695, %v1657_v52 }
 0x77f   : > { %v1852_v22 = vadd.f32 %v3802_v59, %v1851_v23  ;;  %v1700_v23 = vsub.f32 %v4240_v2, %v3676_v4  ;;  %v3838_v10 = vpop.eup %2503  ;;  %2515 = vpow2.f32 %v1822_v15  ;;  %v1661_v4 = vsub.f32 %v3526_v14, %v3777_v61 }
 0x780   : > { %2517 = vpow2.f32 %v1720_v45  ;;  %v1663_v45 = vsub.f32 %v3534_v57, %v3777_v61  ;;  %v1665_v14 = vsub.f32 %v3538_v9, %v3777_v61 }
 0x781   : > { %v1853_v54 = vadd.f32 %v3806_v62, %v1852_v22  ;;  %v1724_v22 = vmul.f32 1.442695, %v1653_v60  ;;  %v3842_v62 = vpop.eup %2505  ;;  %v1818_v11 = vmul.f32 1.442695, %v1700_v23  ;;  %2519 = vpow2.f32 %v1826_v27 }
 0x782   : > { %v1736_v23 = vmul.f32 1.442695, %v1659_v18  ;;  %v1740_v57 = vmul.f32 1.442695, %v1661_v4 }
 0x783   : > { %v1854_v32 = vadd.f32 %v3811_v20, %v1853_v54  ;;  %v3847_v54 = vpop.eup %2507  ;;  %2521 = vpow2.f32 %v1724_v22  ;;  %v1926_v22 = vpack.c.bf16 %v3802_v59, %v3797_v16  ;;  %v1667_v16 = vsub.f32 %v3546_v53, %v3777_v61 }
 0x784   : > { %v3849_v60 = vpop.eup %2509  ;;  %2523 = vpow2.f32 %v1814_v5  ;;  %v1744_v59 = vmul.f32 1.442695, %v1663_v45 }
 0x785   : > { %v1855_v8 = vadd.f32 %v3815_v40, %v1854_v32  ;;  %v3854_v15 = vpop.eup %2511  ;;  %v1810_v32 = vmul.f32 1.442695, %v1696_v7  ;;  %2525 = vpow2.f32 %v1728_v43  ;;  %v1875_v52 = vadd.f32 %v3849_v60, %v3847_v54  ;;  %1944 = vmatpush.bf16.msra.mxu3 %v1926_v22 }
 0x786   : > { %v3856_v56 = vpop.eup %2513  ;;  %2527 = vpow2.f32 %v1818_v11  ;;  %v1942_v5 = vpack.c.bf16 %v3854_v15, %v3842_v62 }
 0x787   : > { %v1856_v2 = vadd.f32 %v3820_v58, %v1855_v8  ;;  %v3861_v27 = vpop.eup %2515  ;;  %2529 = vpow2.f32 %v1732_v63  ;;  %v1924_v63 = vpack.c.bf16 %v3791_v26, %v3786_v48  ;;  %v1671_v48 = vsub.f32 %v3557_v33, %v3777_v61 }
 0x788   : > { %v3869_v21 = vpop.eup %2517  ;;  %2531 = vpow2.f32 %v1810_v32  ;;  %1957 = vmatpush.bf16.msrb.mxu0 %v1942_v5  ;;  %v1752_v26 = vmul.f32 1.442695, %v1667_v16 }
 0x789   : > { %v1857_v25 = vadd.f32 %v3824_v39, %v1856_v2  ;;  %v3874_v8 = vpop.eup %2519  ;;  %v1876_v9 = vadd.f32 %v3869_v21, %v1875_v52  ;;  %2533 = vpow2.f32 %v1736_v23  ;;  %v1669_v2 = vsub.f32 %v3550_v38, %v3777_v61  ;;  %1945 = vmatpush.bf16.msra.mxu3 %v1924_v63  ;;  %v3895_v38 = vpop.permute.xlu1 %481 }
 0x78a   : > { %v3877_v18 = vpop.eup %2521  ;;  %2535 = vpow2.f32 %v1740_v57  ;;  %v1748_v52 = vmul.f32 1.442695, %v1665_v14  ;;  %v1940_v53 = vpack.c.bf16 %v3874_v8, %v3861_v27  ;;  %v4242_v57 = vld [vmem:[#allocation18_spill] sm:$0xff] }
 0x78b   : > { %v1858_v7 = vadd.f32 %v3829_v44, %v1857_v25  ;;  %v2524_v11 = vpop.eup %2523  ;;  %v1877_v4 = vadd.f32 %v3877_v18, %v1876_v9  ;;  %2537 = vpow2.f32 %v1744_v59  ;;  %v3902_v5 = vadd.f32 %v4242_v57, %v3895_v38 }
 0x78c   : > { %v3887_v32 = vpop.eup %2525  ;;  %1958 = vmatpush.bf16.msrb.mxu0 %v1940_v53  ;;  %v1673_v9 = vsub.f32 %v3561_v0, %v3777_v61  ;;  %2539 = vpow2.f32 %v1748_v52  ;;  %v1756_v33 = vmul.f32 1.442695, %v1669_v2  ;;  %v1675_v59 = vsub.f32 %v3566_v41, %v3777_v61 }
 0x78d   : > { %v1859_v43 = vadd.f32 %v3833_v36, %v1858_v7  ;;  %v2528_v45 = vpop.eup %2527  ;;  %v1878_v23 = vadd.f32 %v3887_v32, %v1877_v4  ;;  %v1922_v4 = vpack.c.bf16 %v3779_v13, %v3770_v49  ;;  %v1677_v53 = vsub.f32 %v3570_v55, %v3777_v61 }
 0x78e   : > { %v3893_v22 = vpop.eup %2529  ;;  %v1938_v16 = vpack.c.bf16 %v2528_v45, %v2524_v11  ;;  %v1679_v0 = vsub.f32 %v3574_v47, %v3777_v61  ;;  %v1681_v13 = vsub.f32 %v3578_v19, %v3777_v61  ;;  %2541 = vpow2.f32 %v1752_v26 }
 0x78f   : > { %v1860_v25 = vadd.f32 %v3838_v10, %v1859_v43  ;;  %v2532_v14 = vpop.eup %2531  ;;  %v1879_v43 = vadd.f32 %v3893_v22, %v1878_v23  ;;  %1946 = vmatpush.bf16.msra.mxu3 %v1922_v4  ;;  %v1760_v2 = vmul.f32 1.442695, %v1671_v48  ;;  %v1707_v41 = vsub.f32 %v3680_v51, %v3777_v61  ;;  %v4243_v51 = vld [vmem:[#allocation12_spill] sm:$0xff] }
 0x790   : > { %v3909_v63 = vpop.eup %2533  ;;  %1959 = vmatpush.bf16.msrb.mxu0 %v1938_v16  ;;  %v1709_v55 = vsub.f32 %v3704_v6, %v3777_v61  ;;  %v1920_v52 = vpack.c.bf16 %v3763_v37, %v3756_v1  ;;  %2543 = vpow2.f32 %v1756_v33  ;;  %v1936_v19 = vpack.c.bf16 %v2532_v14, %v3856_v56 }
 0x791   : > { %v1861_v7 = vadd.f32 %v3856_v56, %v1860_v25  ;;  %v1880_v23 = vadd.f32 %v3909_v63, %v1879_v43  ;;  %v3918_v57 = vpop.eup %2535  ;;  %v1764_v43 = vmul.f32 1.442695, %v1673_v9  ;;  %v1683_v48 = vsub.f32 %v3582_v31, %v3777_v61 }
 0x792   : > { %v1685_v26 = vsub.f32 %v4243_v51, %v3777_v61  ;;  %v1768_v4 = vmul.f32 1.442695, %v1675_v59  ;;  %v1703_v37 = vsub.f32 %v3651_v12, %v3777_v61  ;;  %2545 = vpow2.f32 %v1760_v2 }
 0x793   : > { %v1862_v25 = vadd.f32 %v2532_v14, %v1861_v7  ;;  %v1881_v47 = vadd.f32 %v3918_v57, %v1880_v23  ;;  %v3929_v7 = vpop.eup %2537  ;;  %1947 = vmatpush.bf16.msra.mxu3 %v1920_v52  ;;  %v1705_v31 = vsub.f32 %v3666_v28, %v3777_v61  ;;  %v1832_v56 = vmul.f32 1.442695, %v1707_v41 }
 0x794   : > { %1960 = vmatpush.bf16.msrb.mxu0 %v1936_v19  ;;  %v1918_v9 = vpack.c.bf16 %v3749_v29, %v3742_v42  ;;  %2547 = vpow2.f32 %v1764_v43  ;;  %v1934_v12 = vpack.c.bf16 %v3838_v10, %v3833_v36  ;;  %v1699_v59 = vsub.f32 %v3626_v17, %v3777_v61  ;;  %v4245_v43 = vld [vmem:[#allocation23_spill] sm:$0xff] }
 0x795   : > { %v1863_v49 = vadd.f32 %v2524_v11, %v1862_v25  ;;  %v1882_v6 = vadd.f32 %v3929_v7, %v1881_v47  ;;  %v3937_v25 = vpop.eup %2539  ;;  %2549 = vpow2.f32 %v1768_v4  ;;  %v1776_v28 = vmul.f32 1.442695, %v1679_v0 }
 0x796   : > { %v3947_v33 = vpop.eup %2541  ;;  %v1701_v29 = vsub.f32 %v3638_v50, %v3777_v61  ;;  %v1916_v17 = vpack.c.bf16 %v3737_v34, %v3732_v35  ;;  %v1828_v2 = vmul.f32 1.442695, %v1705_v31  ;;  %v1932_v50 = vpack.c.bf16 %v3829_v44, %v3824_v39  ;;  %v4244_v35 = vld [vmem:[#allocation29_spill] sm:$0xff] }
 0x797   : > { %v1864_v11 = vadd.f32 %v2528_v45, %v1863_v49  ;;  %v1772_v45 = vmul.f32 1.442695, %v1677_v53  ;;  %v1883_v14 = vadd.f32 %v3937_v25, %v1882_v6  ;;  %1948 = vmatpush.bf16.msra.mxu3 %v1918_v9  ;;  %v3955_v23 = vpop.eup %2543  ;;  %v1824_v49 = vmul.f32 1.442695, %v1703_v37  ;;  %v4250_v9 = vld [vmem:[#allocation10_spill] sm:$0xff] }
 0x798   : > { %1961 = vmatpush.bf16.msrb.mxu0 %v1934_v12  ;;  %v3963_v10 = vpop.eup %2545  ;;  %v1689_v34 = vsub.f32 %v4244_v35, %v3777_v61  ;;  %v1788_v47 = vmul.f32 1.442695, %v1685_v26  ;;  %v1816_v44 = vmul.f32 1.442695, %v1699_v59  ;;  %v1914_v52 = vpack.c.bf16 %v3727_v30, %v3722_v3  ;;  %v4246_v26 = vld [vmem:[#allocation13_spill] sm:$0xff]  ;;  %v4247_v3 = vld [vmem:[#allocation15_spill] sm:$0xff] }
 0x799   : > { %v1865_v1 = vadd.f32 %v3861_v27, %v1864_v11  ;;  %v1836_v27 = vmul.f32 1.442695, %v1709_v55  ;;  %v1884_v53 = vadd.f32 %v3947_v33, %v1883_v14  ;;  %2551 = vpow2.f32 %v1772_v45  ;;  %v4248_v45 = vld [vmem:[#allocation25_spill] sm:$0xff]  ;;  %v4249_v14 = vld [vmem:[#allocation19_spill] sm:$0xff]  ;;  %v4251_v59 = vld [vmem:[#allocation30_spill] sm:$0xff] }
 0x79a   : > { %2553 = vpow2.f32 %v1832_v56  ;;  %v3973_v55 = vpop.eup %2547  ;;  %v1697_v19 = vsub.f32 %v4245_v43, %v3777_v61  ;;  %v535_v4 = vadd.f32 %v4246_v26, %v3895_v38  ;;  %v1691_v30 = vsub.f32 %v4247_v3, %v3777_v61 }
 0x79b   : > { %v1866_v16 = vadd.f32 %v3874_v8, %v1865_v1  ;;  %v1780_v8 = vmul.f32 1.442695, %v1681_v13  ;;  %v1885_v36 = vadd.f32 %v3955_v23, %v1884_v53  ;;  %2555 = vpow2.f32 %v1836_v27  ;;  %1949 = vmatpush.bf16.msra.mxu3 %v1916_v17  ;;  %v2550_v39 = vpop.eup %2549 }
 0x79c   : > { %2557 = vpow2.f32 %v1776_v28  ;;  %v1784_v13 = vmul.f32 1.442695, %v1683_v48  ;;  %1962 = vmatpush.bf16.msrb.mxu0 %v1932_v50  ;;  %v1820_v48 = vmul.f32 1.442695, %v1701_v29  ;;  %v1693_v31 = vsub.f32 %v4248_v45, %v3777_v61 }
 0x79d   : > { %v1867_v42 = vadd.f32 %v3842_v62, %v1866_v16  ;;  %v1687_v62 = vsub.f32 %v3590_v46, %v3777_v61  ;;  %v1886_v41 = vadd.f32 %v3963_v10, %v1885_v36  ;;  %2559 = vpow2.f32 %v1780_v8 }
 0x79e   : > { %2561 = vpow2.f32 %v1824_v49  ;;  %v1796_v56 = vmul.f32 1.442695, %v1689_v34  ;;  %v1912_v16 = vpack.c.bf16 %v4250_v9, %v4249_v14  ;;  %v1812_v12 = vmul.f32 1.442695, %v1697_v19 }
 0x79f   : > { %v3966_v0 = vadd.f32 %v3854_v15, %v1867_v42  ;;  %v1695_v15 = vsub.f32 %v4227_v24, %v3777_v61  ;;  %v1887_v46 = vadd.f32 %v3973_v55, %v1886_v41  ;;  %v2552_v11 = vpop.eup %2551  ;;  %2563 = vpow2.f32 %v1828_v2  ;;  %1950 = vmatpush.bf16.msra.mxu3 %v1914_v52 }
 0x7a0   : > { %v1930_v24 = vpack.c.bf16 %v3820_v58, %v3815_v40  ;;  %v3986_v51 = vpop.eup %2553  ;;  %2565 = vpow2.f32 %v1784_v13  ;;  %v1792_v6 = vmul.f32 1.442695, %v1687_v62  ;;  %v1928_v28 = vpack.c.bf16 %v3811_v20, %v4251_v59 }
 0x7a1   : > { %v1888_v1 = vadd.f32 %v2550_v39, %v1887_v46  ;;  %v3990_v37 = vpop.eup %2555  ;;  %2567 = vpow2.f32 %v1788_v47  ;;  %v1808_v58 = vmul.f32 1.442695, %v1695_v15  ;;  %v1927_v53 = vpack.c.bf16 %v2552_v11, %v2550_v39 }
 0x7a2   : > { %1963 = vmatpush.bf16.msrb.mxu0 %v1930_v24  ;;  %v3996_v40 = vpop.eup %2557  ;;  %2569 = vpow2.f32 %v1816_v44  ;;  %v1943_v29 = vpack.c.bf16 %v3990_v37, %v3986_v51  ;;  %v4007_v49 = vpack.c.bf16 %v535_v4, %v535_v4  ;;  %v1800_v36 = vmul.f32 1.442695, %v1691_v30 }
 0x7a3   : > { %v1889_v38 = vadd.f32 %v2552_v11, %v1888_v1  ;;  %v4000_v27 = vpop.eup %2559  ;;  %2571 = vpow2.f32 %v1820_v48  ;;  %1951 = vmatpush.bf16.msra.mxu3 %v1912_v16  ;;  %v1315_v20 = vpack.c.bf16 %v3902_v5, %v3902_v5  ;;  %v1804_v62 = vmul.f32 1.442695, %v1693_v31 }
 0x7a4   : > { %v2562_v61 = vpop.eup %2561  ;;  %2573 = vpow2.f32 %v1792_v6  ;;  %v1925_v13 = vpack.c.bf16 %v3973_v55, %v3963_v10  ;;  %v1923_v44 = vpack.c.bf16 %v3955_v23, %v3947_v33  ;;  %v1921_v19 = vpack.c.bf16 %v3937_v25, %v3929_v7 }
 0x7a5   : > { %v1890_v42 = vadd.f32 %v3996_v40, %v1889_v38  ;;  %v2564_v8 = vpop.eup %2563  ;;  %2575 = vpow2.f32 %v1796_v56  ;;  %v1919_v33 = vpack.c.bf16 %v3918_v57, %v3909_v63  ;;  %v1917_v3 = vpack.c.bf16 %v3893_v22, %v3887_v32 }
 0x7a6   : > { %1964 = vmatpush.bf16.msrb.mxu0 %v1928_v28  ;;  %v2566_v17 = vpop.eup %2565  ;;  %2577 = vpow2.f32 %v1808_v58  ;;  %1952 = vmatmul.bf16.vlgmr.msra.gmra.mxu3 %v4007_v49  ;;  %v1941_v34 = vpack.c.bf16 %v2564_v8, %v2562_v61  ;;  %v1915_v25 = vpack.c.bf16 %v3877_v18, %v3869_v21  ;;  %v1913_v57 = vpack.c.bf16 %v3849_v60, %v3847_v54  ;;  %v2024_v28 = vld [vmem:[%s4092_s6] sm:$0xff] }
 0x7a7   : > { %1970 = vmatpush.bf16.msrb.mxu3 %v1927_v53  ;;  %v1891_v2 = vadd.f32 %v4000_v27, %v1890_v42  ;;  %v2568_v50 = vpop.eup %2567  ;;  %2579 = vpow2.f32 %v1812_v12  ;;  %v1929_v32 = vpack.c.bf16 %v4000_v27, %v3996_v40  ;;  %v1869_v21 = vrot.slane %v3966_v0, 4  ;;  %v4252_v53 = vld [vmem:[#allocation20_spill] sm:$0xff]  ;;  %v2025_v42 = vld [vmem:[%s4092_s6 + $0x8] sm:$0xff] }
 0x7a8   : > { %v2570_v41 = vpop.eup %2569  ;;  %2581 = vpow2.f32 %v1800_v36  ;;  %v1931_v56 = vpack.c.bf16 %v2568_v50, %v2566_v17 }
 0x7a9   : > { %v1892_v35 = vadd.f32 %v2566_v17, %v1891_v2  ;;  %1965 = vmatmul.bf16.vlgmr.msrb.gmra.mxu0 %v1315_v20  ;;  %v2572_v15 = vpop.eup %2571  ;;  %2583 = vpow2.f32 %v1804_v62  ;;  %v1870_v18 = vadd.f32 %v1869_v21, %v3966_v0 }
 0x7aa   : > { %1983 = vmatpush.bf16.msra.mxu0 %v1943_v29  ;;  %v2574_v5 = vpop.eup %2573  ;;  %v1939_v11 = vpack.c.bf16 %v2572_v15, %v2570_v41 }
 0x7ab   : > { %1971 = vmatpush.bf16.msrb.mxu3 %v1925_v13  ;;  %v1893_v47 = vadd.f32 %v2568_v50, %v1892_v35  ;;  %v2576_v39 = vpop.eup %2575  ;;  %v1871_v38 = vrot.slane %v1870_v18, 2  ;;  %v4253_v13 = vld [vmem:[#allocation22_spill] sm:$0xff]  ;;  %v2013_v35 = vpop.permute.xlu1 %2012 }
 0x7ac   : > { %v2578_v46 = vpop.eup %2577  ;;  %v1933_v45 = vpack.c.bf16 %v2576_v39, %v2574_v5 }
 0x7ad   : > { %v1894_v52 = vadd.f32 %v2574_v5, %v1893_v47  ;;  %v2580_v43 = vpop.eup %2579  ;;  %v1872_v14 = vadd.f32 %v1871_v38, %v1870_v18 }
 0x7ae   : > { %1984 = vmatpush.bf16.msra.mxu0 %v1941_v34  ;;  %v2582_v55 = vpop.eup %2581  ;;  %v1937_v24 = vpack.c.bf16 %v2580_v43, %v2578_v46  ;;  %v2589_v34 = vld [vmem:[%s2760_s21] sm:$0xff] }
 0x7af   : > { %1972 = vmatpush.bf16.msrb.mxu3 %v1923_v44  ;;  %v1895_v10 = vadd.f32 %v2576_v39, %v1894_v52  ;;  %v2584_v26 = vpop.eup %2583  ;;  %v1873_v9 = vrot.slane %v1872_v14, 1  ;;  %v2590_v44 = vld [vmem:[%s2760_s21 + $0x10] sm:$0xff] }
 0x7b0   : > { %v1935_v6 = vpack.c.bf16 %v2584_v26, %v2582_v55 }
 0x7b1   : > { %v1896_v48 = vadd.f32 %v2582_v55, %v1895_v10  ;;  %v1874_v54 = vadd.f32 %v1873_v9, %v1872_v14 }
 0x7b2   : > { %1985 = vmatpush.bf16.msra.mxu0 %v1939_v11 }
 0x7b3   : > { %1973 = vmatpush.bf16.msrb.mxu3 %v1921_v19  ;;  %v1897_v4 = vadd.f32 %v2584_v26, %v1896_v48  ;;  %2585 = vrcp.f32 %v1874_v54  ;;  %v2018_v39 = vpop.permute.xlu1 %2017  ;;  %v2592_v48 = vld [vmem:[%s2760_s21 + $0x18] sm:$0xff] }
 0x7b5   : > { %v1898_v23 = vadd.f32 %v2578_v46, %v1897_v4  ;;  %v2022_v46 = vadd.f32 %v2590_v44, %v2018_v39 }
 0x7b6   : > { %1986 = vmatpush.bf16.msra.mxu0 %v1937_v24  ;;  %v2023_v24 = vadd.f32 %v2592_v48, %v2018_v39 }
 0x7b7   : > { %1974 = vmatpush.bf16.msrb.mxu3 %v1919_v33  ;;  %v1899_v1 = vadd.f32 %v2580_v43, %v1898_v23  ;;  %v2591_v43 = vld [vmem:[%s2760_s21 + $0x8] sm:$0xff] }
 0x7b8   : > { %v2021_v10 = vadd.f32 %v2591_v43, %v2013_v35 }
 0x7b9   : > { %v1900_v30 = vadd.f32 %v2570_v41, %v1899_v1  ;;  %v2586_v27 = vpop.eup %2585 }
 0x7ba   : > { %1987 = vmatpush.bf16.msra.mxu0 %v1935_v6 }
 0x7bb   : > { %1975 = vmatpush.bf16.msrb.mxu3 %v1917_v3  ;;  %v1901_v7 = vadd.f32 %v2572_v15, %v1900_v30  ;;  %v2020_v15 = vadd.f32 %v2589_v34, %v2013_v35 }
 0x7bd   : > { %v1902_v31 = vadd.f32 %v2562_v61, %v1901_v7 }
 0x7be   : > { %1988 = vmatpush.bf16.msra.mxu0 %v1933_v45 }
 0x7bf   : > { %1976 = vmatpush.bf16.msrb.mxu3 %v1915_v25  ;;  %v1903_v63 = vadd.f32 %v2564_v8, %v1902_v31 }
 0x7c1   : > { %v1904_v58 = vadd.f32 %v3986_v51, %v1903_v63 }
 0x7c2   : > { %1989 = vmatpush.bf16.msra.mxu0 %v1931_v56 }
 0x7c3   : > { %1977 = vmatpush.bf16.msrb.mxu3 %v1913_v57  ;;  %v1905_v22 = vadd.f32 %v3990_v37, %v1904_v58 }
 0x7c5   : > { %v1906_v16 = vrot.slane %v1905_v22, 4 }
 0x7c6   : > { %1990 = vmatpush.bf16.msra.mxu0 %v1929_v32  ;;  %1978 = vmatmul.bf16.vlgmr.msrb.gmra.mxu3 %v4007_v49 }
 0x7c7   : > { %v1907_v59 = vadd.f32 %v1906_v16, %v1905_v22 }
 0x7c9   : > { %1991 = vmatmul.bf16.vlgmr.msra.gmra.mxu0 %v1315_v20  ;;  %v1908_v61 = vrot.slane %v1907_v59, 2 }
 0x7cb   : > { %v1909_v29 = vadd.f32 %v1908_v61, %v1907_v59 }
 0x7cd   : > { %v1910_v8 = vrot.slane %v1909_v29, 1 }
 0x7cf   : > { %v1911_v49 = vadd.f32 %v1910_v8, %v1909_v29 }
 0x7d1   : > { %2587 = vrcp.f32 %v1911_v49 }
 0x7d7   : > { %v2588_v2 = vpop.eup %2587 }
 0x826   : > { %v1966_v60 = vpop.f32.mrf.mxu0 }
 0x829   : > { %v1953_v51 = vpop.f32.mrf.mxu3 }
 0x82a   : > { %v1967_v40 = vadd.f32 %v1966_v60, %v1953_v51 }
 0x82c   : > { %v1998_v12 = vmul.f32 %v2586_v27, %v1967_v40 }
 0x82e   : > { %v1968_v37 = vpop.f32.mrf.mxu0  ;;  %2050 = vmatpush.msra.mxu3 %v1998_v12 }
 0x830   : > { %2051 = vmatpush.msra.mxu3 %v4252_v53 }
 0x831   : > { %v1955_v0 = vpop.f32.mrf.mxu3  ;;  %2259 = vmatmul.msk.f32.vlgmr.msra.gmra.mxu3 %vm330_vm1, %v2024_v28 }
 0x839   : > { %2260 = vmatmul.msk.f32.gmra.mxu3 %vm330_vm1, %v2025_v42 }
 0x846   : > { %v1992_v36 = vpop.f32.mrf.mxu0 }
 0x849   : > { %v1979_v17 = vpop.f32.mrf.mxu3 }
 0x84a   : > { %v1993_v20 = vadd.f32 %v1992_v36, %v1979_v17 }
 0x84c   : > { %v1999_v50 = vmul.f32 %v2588_v2, %v1993_v20 }
 0x84e   : > { %v1994_v62 = vpop.f32.mrf.mxu0  ;;  %2073 = vmatpush.msrb.mxu0 %v1999_v50 }
 0x850   : > { %2074 = vmatpush.msrb.mxu0 %v4253_v13 }
 0x851   : > { %v1981_v41 = vpop.f32.mrf.mxu3  ;;  %2261 = vmatmul.msk.f32.vlgmr.msrb.gmra.mxu0 %vm330_vm1, %v2024_v28 }
 0x859   : > { %2262 = vmatmul.msk.f32.gmra.mxu0 %vm330_vm1, %v2025_v42 }
 0x8b4   : > { %v2053_v5 = vpop.f32.mrf.mxu3 }
 0x8b5   : > { %v2082_v47 = vadd.f32 %v2053_v5, %v2020_v15 }
 0x8b7   : > { %2086 = vst [vmem:[%s298_s22] sm:$0xff] %v2082_v47 }
 0x8bc   : > { %v2056_v52 = vpop.f32.mrf.mxu3 }
 0x8bd   : > { %v2084_v11 = vadd.f32 %v2056_v52, %v2022_v46 }
 0x8bf   : > { %2088 = vst [vmem:[%s298_s22 + $0x10] sm:$0xff] %v2084_v11 }
 0x8ce   : > { %v2076_v55 = vpop.f32.mrf.mxu0 }
 0x8cf   : > { %v2083_v19 = vadd.f32 %v2076_v55, %v2021_v10 }
 0x8d1   : > { %2087 = vst [vmem:[%s298_s22 + $0x8] sm:$0xff] %v2083_v19 }
 0x8d6   : > { %v2079_v26 = vpop.f32.mrf.mxu0 }
 0x8d7   : > { %v2085_v4 = vadd.f32 %v2079_v26, %v2023_v24 }
 0x8d9   : > { %2089 = vst [vmem:[%s298_s22 + $0x18] sm:$0xff] %v2085_v4 }
 0x8da   : > { %2620 = shalt.err (!%p2617_p3)
}
 0x8db   : > { %s2660_s19 = smov 256   ;;  %s2661_s22 = smov 16  }
 0x8dc   : > { %2274 = dma.vmem_to_hbm [thread:$0]  (%p2745_p5), %s2104_s10, 512, %s2106_s12, %s2091_s13, %s2660_s19, %s2660_s19, %s2661_s22  }
 0x8dd PF: > { %p2280_p4 = scmp.ge.s32.totalorder %s2655_s30, 2  ;;  %s2120_s25 = sand.u32 1, %s2643_s27  }
 0x8de   : > { %s2121_s26 = scalar_lea.sflag [#allocation8], %s2120_s25 }
 0x8df   : > { %p2277_p7 = pnand %p2280_p4, %p2749_p6 }
 0x8e1   : > { %p2278_p8 = pneg %p2277_p7 }
 0x8e3   : > { %2638 = dma.done.wait (%p2278_p8), %s2121_s26, 512  }
 0x8e4   : > { %2640 = vsyncadd (%p2278_p8), %s2121_s26, 4294966784  ;;  %p18_p9 = scmp.ge.s32.totalorder %s2732_s11, 4   ;;  %s4254_s27 = smov %s2647_s28 }
 0x8e5   : > { %s4255_s28 = smov %s2651_s29  ;;  %s4256_s29 = smov %s2743_s14 }
 0x8e6   : > { %s4257_s30 = smov %s2732_s11  ;;  %20 = sbr.rel (!%p18_p9) target bundleno = 3 (0x3), region = 95 }
 0x8eb   :  { %2127 = vsyncpa [#allocation8], 1 }
 0x8ec   :  { %2129 = vsyncpa [#allocation8 + $0x1], 1 }

</bundles_post_ra>
